<compile_context>
chip_gen: v7x
topology: tpu7x:2x2x1
jax: 0.10.0
libtpu: 0.0.40
codegen_flags: <defaults>
</compile_context>

<pallas_src>
import functools
import math

import jax
import jax.numpy as jnp
from jax import lax
from jax.experimental import pallas as pl
from jax.experimental.pallas import tpu as pltpu


# ---------------------------------------------------------------------------
# Tiling helpers
# ---------------------------------------------------------------------------

def _pick_block(n, target, align):
    """Largest multiple of `align` <= target that divides n, else full n."""
    if n <= target:
        return n
    t = (target // align) * align
    while t >= align:
        if n % t == 0:
            return t
        t -= align
    return n


def _largest_divisor_leq(n, cap):
    for d in range(min(n, cap), 0, -1):
        if n % d == 0:
            return d
    return 1


# ---------------------------------------------------------------------------
# Pallas kernels
# ---------------------------------------------------------------------------

def _norm_linear_plain_kernel(x_ref, g_ref, wt_ref, o_ref, *, dim_scale):
    """out = rmsnorm(x) @ wt   (wt pre-transposed, bf16)."""
    x = x_ref[...]                                               # (tm, D) f32
    inv = lax.rsqrt(jnp.maximum(jnp.sum(x * x, axis=-1, keepdims=True), 1e-24))
    xn = x * inv * dim_scale * (g_ref[...] + 1.0)                # F.normalize * sqrt(d) * (g+1)
    o_ref[...] = jnp.dot(xn.astype(jnp.bfloat16), wt_ref[...],
                         preferred_element_type=jnp.float32)


def _norm_linear_l2_kernel(x_ref, g_ref, wt_ref, c_ref, o_ref, *, dim_scale):
    """out = -||rmsnorm(x) - w||^2 + bias = 2*xn@wt - ||xn||^2 + (bias - ||w||^2)."""
    x = x_ref[...]                                               # (tm, D) f32
    inv = lax.rsqrt(jnp.maximum(jnp.sum(x * x, axis=-1, keepdims=True), 1e-24))
    xn = x * inv * dim_scale * (g_ref[...] + 1.0)
    xw = jnp.dot(xn.astype(jnp.bfloat16), wt_ref[...],
                 preferred_element_type=jnp.float32)             # (tm, tn)
    xx = jnp.sum(xn * xn, axis=-1, keepdims=True)                # (tm, 1) f32
    o_ref[...] = 2.0 * xw - xx + c_ref[...]                      # c = bias - ||w||^2


def _linear_residual_kernel(h_ref, wt_ref, r_ref, o_ref, acc_ref):
    """out = residual + h @ wt, K-tiled with a resident f32 accumulator."""
    @pl.when(pl.program_id(2) == 0)
    def _():
        acc_ref[...] = jnp.zeros_like(acc_ref)

    acc_ref[...] += jnp.dot(h_ref[...].astype(jnp.bfloat16), wt_ref[...],
                            preferred_element_type=jnp.float32)

    @pl.when(pl.program_id(2) == pl.num_programs(2) - 1)
    def _():
        o_ref[...] = acc_ref[...] + r_ref[...]


def _attn_kernel(qkv_ref, o_ref, *, heads, dim_head, scale, batch_block):
    """Causal attention with -||q - k||^2 similarity.

    qkv_ref: (bb, n, 3*heads*dim_head) block — all heads of `bb` batch items
    are handled in one grid step so the HBM blocks stay lane-dense.
    """
    n = qkv_ref.shape[1]
    hd = heads * dim_head
    row = lax.broadcasted_iota(jnp.int32, (n, n), 0)
    col = lax.broadcasted_iota(jnp.int32, (n, n), 1)
    causal = col > row
    neg_big = -jnp.finfo(jnp.float32).max

    for bi in range(batch_block):
        qkv = qkv_ref[bi]                                        # (n, 3*hd) f32
        q_all = qkv[:, 0:hd]
        k_all = qkv[:, hd:2 * hd]
        v_all = qkv[:, 2 * hd:3 * hd]
        outs = []
        for h in range(heads):
            s = slice(h * dim_head, (h + 1) * dim_head)
            q = q_all[:, s]
            k = k_all[:, s]
            v = v_all[:, s]
            qq = jnp.sum(q * q, axis=-1, keepdims=True)          # (n, 1) f32
            kk = jnp.sum(k * k, axis=-1, keepdims=True)          # (n, 1) f32
            qk = lax.dot_general(q.astype(jnp.bfloat16), k.astype(jnp.bfloat16),
                                 (((1,), (1,)), ((), ())),
                                 preferred_element_type=jnp.float32)   # (n, n)
            sim = (2.0 * qk - qq - jnp.transpose(kk)) * scale    # -l2sq * scale
            sim = jnp.where(causal, neg_big, sim)
            sim = sim - jnp.max(sim, axis=-1, keepdims=True)
            p = jnp.exp(sim)
            p = p * pl.reciprocal(jnp.sum(p, axis=-1, keepdims=True), approx=True)
            outs.append(jnp.dot(p.astype(jnp.bfloat16), v.astype(jnp.bfloat16),
                                preferred_element_type=jnp.float32))
        # single lane-dense store of all heads
        o_ref[bi] = jnp.concatenate(outs, axis=-1)
    # TODO(synk): switch to a tiled online-softmax (flash) formulation for long
    # sequences so the (n, n) score tile stays bounded on v7x's 64 MiB VMEM.


# ---------------------------------------------------------------------------
# Pallas wrappers
# ---------------------------------------------------------------------------

def norm_linear(x2d, gamma, wt, c=None, *, tm_target=256, tn_target=512):
    """Fused rmsnorm + projection.

    x2d: (M, D) f32, gamma: (1, D) f32, wt: (D, N) bf16 (pre-transposed),
    c: optional (1, N) f32 = bias - ||w||^2  (L2-distance mode when given).
    D (the reduction axis) is kept whole because the norm needs the full row.
    """
    M, D = x2d.shape
    N = wt.shape[1]
    tm = _pick_block(M, tm_target, 8)
    tn = _pick_block(N, tn_target, 128)
    grid = (M // tm, N // tn)

    in_specs = [
        pl.BlockSpec((tm, D), lambda i, j: (i, 0)),
        pl.BlockSpec((1, D), lambda i, j: (0, 0)),
        pl.BlockSpec((D, tn), lambda i, j: (0, j)),
    ]
    args = [x2d, gamma, wt]
    if c is not None:
        kernel = _norm_linear_l2_kernel
        in_specs.append(pl.BlockSpec((1, tn), lambda i, j: (0, j)))
        args.append(c)
    else:
        kernel = _norm_linear_plain_kernel

    return pl.pallas_call(
        functools.partial(kernel, dim_scale=float(math.sqrt(D))),
        out_shape=jax.ShapeDtypeStruct((M, N), jnp.float32),
        grid=grid,
        in_specs=in_specs,
        out_specs=pl.BlockSpec((tm, tn), lambda i, j: (i, j)),
        compiler_params=pltpu.CompilerParams(
            dimension_semantics=("parallel", "parallel")),
    )(*args)


def linear_residual(h2d, wt, res2d, *, tm_target=256, tn_target=512,
                    tk_target=512):
    """out = res + h @ wt.  h2d: (M, K) f32, wt: (K, N) bf16, res2d: (M, N) f32."""
    M, K = h2d.shape
    N = wt.shape[1]
    tm = _pick_block(M, tm_target, 8)
    tn = _pick_block(N, tn_target, 128)
    tk = _pick_block(K, tk_target, 128)
    grid = (M // tm, N // tn, K // tk)

    return pl.pallas_call(
        _linear_residual_kernel,
        out_shape=jax.ShapeDtypeStruct((M, N), jnp.float32),
        grid=grid,
        in_specs=[
            pl.BlockSpec((tm, tk), lambda i, j, k: (i, k)),
            pl.BlockSpec((tk, tn), lambda i, j, k: (k, j)),
            pl.BlockSpec((tm, tn), lambda i, j, k: (i, j)),
        ],
        out_specs=pl.BlockSpec((tm, tn), lambda i, j, k: (i, j)),
        scratch_shapes=[pltpu.VMEM((tm, tn), jnp.float32)],
        compiler_params=pltpu.CompilerParams(
            dimension_semantics=("parallel", "parallel", "arbitrary")),
    )(h2d, wt, res2d)


def attention(qkv3, heads, dim_head, *, scale):
    """qkv3: (b, n, 3*heads*dim_head) f32 -> (b, n, heads*dim_head) f32."""
    b, n, hd3 = qkv3.shape
    hd = heads * dim_head
    # block several batch items per grid step (~<= 2 MiB of qkv per block)
    tgt = max(1, (2 << 20) // max(1, n * hd3 * 4))
    bb = _largest_divisor_leq(b, tgt)
    grid = (b // bb,)

    return pl.pallas_call(
        functools.partial(_attn_kernel, heads=heads, dim_head=dim_head,
                          scale=float(scale), batch_block=bb),
        out_shape=jax.ShapeDtypeStruct((b, n, hd), jnp.float32),
        grid=grid,
        in_specs=[pl.BlockSpec((bb, n, hd3), lambda i: (i, 0, 0))],
        out_specs=pl.BlockSpec((bb, n, hd), lambda i: (i, 0, 0)),
        compiler_params=pltpu.CompilerParams(
            dimension_semantics=("parallel",)),
    )(qkv3)


# ---------------------------------------------------------------------------
# Model forward (embedding gather in plain JAX, everything else in Pallas)
# ---------------------------------------------------------------------------

def transformer_forward(params, tokens, *, heads, dim_head):
    b, n = tokens.shape
    dim = params["token_emb"].shape[-1]
    hd = heads * dim_head
    scale = dim_head ** -0.5

    x = params["token_emb"][tokens] + params["pos_emb"][:n]      # (b, n, dim)
    x2 = x.reshape(b * n, dim)

    for layer in params["layers"]:
        # --- attention block: x = attn(norm(x)) + x ---------------------
        qkv = norm_linear(x2, layer["attn_gamma"], layer["w_qkv_t"])
        attn_out = attention(qkv.reshape(b, n, 3 * hd), heads, dim_head,
                             scale=scale)
        x2 = linear_residual(attn_out.reshape(b * n, hd),
                             layer["w_attn_out_t"], x2)
        # --- feedforward block: x = ff(norm(x)) + x ----------------------
        h = norm_linear(x2, layer["ff_gamma"], layer["w_ff_in_t"],
                        layer["c_ff_in"])
        # TODO(synk): fuse the exact erf GELU into the projection kernels once
        # erf lowering in Mosaic is confirmed; kept as a plain-JAX op for now.
        h = jax.nn.gelu(h, approximate=False)
        x2 = linear_residual(h, layer["w_ff_out_t"], x2)

    logits = norm_linear(x2, params["final_gamma"], params["emb_t"],
                         params["c_logits"])
    return logits.reshape(b, n, params["emb_t"].shape[1])


# ---------------------------------------------------------------------------
# Parameter initialization (torch layout) + inference-layout preparation
# ---------------------------------------------------------------------------

def init_params(key, *, num_tokens, dim, depth, max_seq_len, dim_head, heads,
                ff_mult):
    dim_inner_attn = heads * dim_head
    dim_inner_ff = int(dim * ff_mult)

    def linear_init(k, out_f, in_f):
        bound = 1.0 / math.sqrt(in_f)
        return jax.random.uniform(k, (out_f, in_f), jnp.float32, -bound, bound)

    keys = jax.random.split(key, 2 + depth)
    params = {
        "token_emb": jax.random.normal(keys[0], (num_tokens, dim), jnp.float32),
        "pos_emb": jax.random.normal(keys[1], (max_seq_len, dim), jnp.float32),
        "final_norm_gamma": jnp.zeros((dim,), jnp.float32),
        "layers": [],
    }
    for l in range(depth):
        lk = jax.random.split(keys[2 + l], 5)
        params["layers"].append({
            "attn_norm_gamma": jnp.zeros((dim,), jnp.float32),
            "ff_norm_gamma": jnp.zeros((dim,), jnp.float32),
            "attn": {
                "w_qkv": linear_init(lk[0], dim_inner_attn * 3, dim),
                "w_out": linear_init(lk[1], dim, dim_inner_attn),
            },
            "ff": {
                # L2DistanceLinear: weights/bias ~ torch.randn
                "w_in": jax.random.normal(lk[2], (dim_inner_ff, dim), jnp.float32),
                "b_in": jax.random.normal(lk[3], (dim_inner_ff,), jnp.float32),
                "w_out": linear_init(lk[4], dim, dim_inner_ff),
            },
        })
    return params


def prepare_params(raw):
    """Convert torch-layout params to the kernel layout: pre-transposed bf16
    weights and precomputed (bias - ||w||^2) rows (done once, outside jit)."""
    emb = raw["token_emb"]
    prep = {
        "token_emb": emb,                                        # f32, for gather
        "emb_t": jnp.transpose(emb).astype(jnp.bfloat16),        # (dim, vocab)
        "c_logits": (-jnp.sum(emb * emb, axis=-1))[None, :],     # (1, vocab) f32
        "pos_emb": raw["pos_emb"],
        "final_gamma": raw["final_norm_gamma"][None, :],
        "layers": [],
    }
    for layer in raw["layers"]:
        w_in = layer["ff"]["w_in"]
        prep["layers"].append({
            "attn_gamma": layer["attn_norm_gamma"][None, :],
            "ff_gamma": layer["ff_norm_gamma"][None, :],
            "w_qkv_t": jnp.transpose(layer["attn"]["w_qkv"]).astype(jnp.bfloat16),
            "w_attn_out_t": jnp.transpose(layer["attn"]["w_out"]).astype(jnp.bfloat16),
            "w_ff_in_t": jnp.transpose(w_in).astype(jnp.bfloat16),
            "c_ff_in": (layer["ff"]["b_in"]
                        - jnp.sum(w_in * w_in, axis=-1))[None, :],
            "w_ff_out_t": jnp.transpose(layer["ff"]["w_out"]).astype(jnp.bfloat16),
        })
    return prep


# ---------------------------------------------------------------------------
# Main
# ---------------------------------------------------------------------------

if __name__ == "__main__":
    num_tokens = 32
    dim = 32
    depth = 2
    max_seq_len = 16
    dim_head = 8
    heads = 4
    ff_mult = 4

    batch = 2
    seq = 8

    key = jax.random.PRNGKey(0)
    pkey, tkey = jax.random.split(key)
    raw_params = init_params(pkey, num_tokens=num_tokens, dim=dim, depth=depth,
                             max_seq_len=max_seq_len, dim_head=dim_head,
                             heads=heads, ff_mult=ff_mult)
    params = prepare_params(raw_params)
    tokens = jax.random.randint(tkey, (batch, seq), 0, num_tokens, jnp.int32)

    fwd = jax.jit(functools.partial(transformer_forward, heads=heads,
                                    dim_head=dim_head))
    logits = fwd(params, tokens)
    jax.block_until_ready(logits)
    assert logits.shape == (batch, seq, num_tokens)
    assert bool(jnp.all(jnp.isfinite(logits)))
    print("KERNEL_OK")
</pallas_src>

<mosaic_0001>
module attributes {stable_mosaic.version = 11 : i64} {
  func.func @_linear_residual_kernel(%arg0: i32, %arg1: i32, %arg2: i32, %arg3: memref<16x32xf32, #tpu.memory_space<vmem>>, %arg4: memref<32x32xbf16, #tpu.memory_space<vmem>>, %arg5: memref<16x32xf32, #tpu.memory_space<vmem>>, %arg6: memref<16x32xf32, #tpu.memory_space<vmem>>, %arg7: memref<16x32xf32, #tpu.memory_space<vmem>>) attributes {dimension_semantics = [#tpu.dimension_semantics<parallel>, #tpu.dimension_semantics<parallel>, #tpu.dimension_semantics<arbitrary>], iteration_bounds = array<i64: 1, 1, 1>, scalar_prefetch = 0 : i64, scratch_operands = 1 : i64, tpu.core_type = #tpu.core_type<tc>, window_params = [{transform_indices = @transform_0, window_bounds = array<i64: 16, 32>}, {transform_indices = @transform_1, window_bounds = array<i64: 32, 32>}, {transform_indices = @transform_2, window_bounds = array<i64: 16, 32>}, {transform_indices = @transform_3, window_bounds = array<i64: 16, 32>}]} {
    %c0_i32 = arith.constant 0 : i32
    %0 = arith.cmpi eq, %arg2, %c0_i32 : i32
    %1 = arith.extui %0 : i1 to i32
    %c0_i32_0 = arith.constant 0 : i32
    %2 = arith.cmpi ne, %1, %c0_i32_0 : i32
    scf.if %2 {
      %cst_10 = arith.constant 0.000000e+00 : f32
      %13 = vector.broadcast %cst_10 : f32 to vector<16x32xf32>
      %c0_11 = arith.constant 0 : index
      %c0_12 = arith.constant 0 : index
      %14 = vector.load %arg7[%c0_11, %c0_12] : memref<16x32xf32, #tpu.memory_space<vmem>>, vector<16x32xf32>
      tpu.vector_store %arg7[%c0_11, %c0_12], %13 {strides = array<i32>} : memref<16x32xf32, #tpu.memory_space<vmem>>, vector<16x32xf32>,
    } else {
    }
    %c0 = arith.constant 0 : index
    %c0_1 = arith.constant 0 : index
    %3 = vector.load %arg7[%c0, %c0_1] : memref<16x32xf32, #tpu.memory_space<vmem>>, vector<16x32xf32>
    %c0_2 = arith.constant 0 : index
    %c0_3 = arith.constant 0 : index
    %4 = vector.load %arg3[%c0_2, %c0_3] : memref<16x32xf32, #tpu.memory_space<vmem>>, vector<16x32xf32>
    %5 = arith.truncf %4 : vector<16x32xf32> to vector<16x32xbf16>
    %c0_4 = arith.constant 0 : index
    %c0_5 = arith.constant 0 : index
    %6 = vector.load %arg4[%c0_4, %c0_5] : memref<32x32xbf16, #tpu.memory_space<vmem>>, vector<32x32xbf16>
    %cst = arith.constant dense<0.000000e+00> : vector<16x32xf32>
    %7 = tpu.matmul %5, %6, %cst {dimension_numbers = #tpu.dot_dimension_numbers<[1], [0], [0], [1], [0, 0, 1, 1], [], []>} : vector<16x32xbf16>, vector<32x32xbf16>, vector<16x32xf32> -> vector<16x32xf32>
    %8 = arith.addf %3, %7 : vector<16x32xf32>
    %c0_6 = arith.constant 0 : index
    %c0_7 = arith.constant 0 : index
    %9 = vector.load %arg7[%c0_6, %c0_7] : memref<16x32xf32, #tpu.memory_space<vmem>>, vector<16x32xf32>
    tpu.vector_store %arg7[%c0_6, %c0_7], %8 {strides = array<i32>} : memref<16x32xf32, #tpu.memory_space<vmem>>, vector<16x32xf32>,
    %c0_i32_8 = arith.constant 0 : i32
    %10 = arith.cmpi eq, %arg2, %c0_i32_8 : i32
    %11 = arith.extui %10 : i1 to i32
    %c0_i32_9 = arith.constant 0 : i32
    %12 = arith.cmpi ne, %11, %c0_i32_9 : i32
    scf.if %12 {
      %c0_10 = arith.constant 0 : index
      %c0_11 = arith.constant 0 : index
      %13 = vector.load %arg7[%c0_10, %c0_11] : memref<16x32xf32, #tpu.memory_space<vmem>>, vector<16x32xf32>
      %c0_12 = arith.constant 0 : index
      %c0_13 = arith.constant 0 : index
      %14 = vector.load %arg5[%c0_12, %c0_13] : memref<16x32xf32, #tpu.memory_space<vmem>>, vector<16x32xf32>
      %15 = arith.addf %13, %14 : vector<16x32xf32>
      %c0_14 = arith.constant 0 : index
      %c0_15 = arith.constant 0 : index
      %16 = vector.load %arg6[%c0_14, %c0_15] : memref<16x32xf32, #tpu.memory_space<vmem>>, vector<16x32xf32>
      tpu.vector_store %arg6[%c0_14, %c0_15], %15 {strides = array<i32>} : memref<16x32xf32, #tpu.memory_space<vmem>>, vector<16x32xf32>,
    } else {
    }
    return
  }
  func.func @transform_0(%arg0: i32, %arg1: i32, %arg2: i32) -> (i32, i32) {
    %c0_i32 = arith.constant 0 : i32
    return %arg0, %arg2 : i32, i32
  }
  func.func @transform_1(%arg0: i32, %arg1: i32, %arg2: i32) -> (i32, i32) {
    %c0_i32 = arith.constant 0 : i32
    return %arg2, %arg1 : i32, i32
  }
  func.func @transform_2(%arg0: i32, %arg1: i32, %arg2: i32) -> (i32, i32) {
    %c0_i32 = arith.constant 0 : i32
    return %arg0, %arg1 : i32, i32
  }
  func.func @transform_3(%arg0: i32, %arg1: i32, %arg2: i32) -> (i32, i32) {
    %c0_i32 = arith.constant 0 : i32
    return %arg0, %arg1 : i32, i32
  }
}

module attributes {stable_mosaic.version = 11 : i64} {
  func.func @_norm_linear_plain_kernel(%arg0: i32, %arg1: i32, %arg2: memref<16x32xf32, #tpu.memory_space<vmem>>, %arg3: memref<1x32xf32, #tpu.memory_space<vmem>>, %arg4: memref<32x96xbf16, #tpu.memory_space<vmem>>, %arg5: memref<16x96xf32, #tpu.memory_space<vmem>>) attributes {dimension_semantics = [#tpu.dimension_semantics<parallel>, #tpu.dimension_semantics<parallel>], iteration_bounds = array<i64: 1, 1>, scalar_prefetch = 0 : i64, scratch_operands = 0 : i64, tpu.core_type = #tpu.core_type<tc>, window_params = [{transform_indices = @transform_0, window_bounds = array<i64: 16, 32>}, {pipeline_mode = #tpu.pipeline_mode<synchronous>, transform_indices = @transform_1, window_bounds = array<i64: 1, 32>}, {transform_indices = @transform_2, window_bounds = array<i64: 32, 96>}, {transform_indices = @transform_3, window_bounds = array<i64: 16, 96>}]} {
    %c0 = arith.constant 0 : index
    %c0_0 = arith.constant 0 : index
    %0 = vector.load %arg2[%c0, %c0_0] : memref<16x32xf32, #tpu.memory_space<vmem>>, vector<16x32xf32>
    %1 = arith.mulf %0, %0 : vector<16x32xf32>
    %cst = arith.constant dense<0.000000e+00> : vector<16xf32>
    %2 = vector.multi_reduction <add>, %1, %cst [1] : vector<16x32xf32> to vector<16xf32>
    %3 = vector.shape_cast %2 : vector<16xf32> to vector<16x1xf32>
    %cst_1 = arith.constant 1.000000e-24 : f32
    %4 = vector.broadcast %cst_1 : f32 to vector<16x1xf32>
    %5 = arith.maximumf %3, %4 : vector<16x1xf32>
    %6 = math.rsqrt %5 : vector<16x1xf32>
    %7 = vector.broadcast %6 : vector<16x1xf32> to vector<16x32xf32>
    %8 = arith.mulf %0, %7 : vector<16x32xf32>
    %cst_2 = arith.constant 5.65685415 : f32
    %9 = vector.broadcast %cst_2 : f32 to vector<16x32xf32>
    %10 = arith.mulf %8, %9 : vector<16x32xf32>
    %c0_3 = arith.constant 0 : index
    %c0_4 = arith.constant 0 : index
    %11 = vector.load %arg3[%c0_3, %c0_4] : memref<1x32xf32, #tpu.memory_space<vmem>>, vector<1x32xf32>
    %cst_5 = arith.constant 1.000000e+00 : f32
    %12 = vector.broadcast %cst_5 : f32 to vector<1x32xf32>
    %13 = arith.addf %11, %12 : vector<1x32xf32>
    %14 = vector.broadcast %13 : vector<1x32xf32> to vector<16x32xf32>
    %15 = arith.mulf %10, %14 : vector<16x32xf32>
    %16 = arith.truncf %15 : vector<16x32xf32> to vector<16x32xbf16>
    %c0_6 = arith.constant 0 : index
    %c0_7 = arith.constant 0 : index
    %17 = vector.load %arg4[%c0_6, %c0_7] : memref<32x96xbf16, #tpu.memory_space<vmem>>, vector<32x96xbf16>
    %cst_8 = arith.constant dense<0.000000e+00> : vector<16x96xf32>
    %18 = tpu.matmul %16, %17, %cst_8 {dimension_numbers = #tpu.dot_dimension_numbers<[1], [0], [0], [1], [0, 0, 1, 1], [], []>} : vector<16x32xbf16>, vector<32x96xbf16>, vector<16x96xf32> -> vector<16x96xf32>
    %c0_9 = arith.constant 0 : index
    %c0_10 = arith.constant 0 : index
    %19 = vector.load %arg5[%c0_9, %c0_10] : memref<16x96xf32, #tpu.memory_space<vmem>>, vector<16x96xf32>
    tpu.vector_store %arg5[%c0_9, %c0_10], %18 {strides = array<i32>} : memref<16x96xf32, #tpu.memory_space<vmem>>, vector<16x96xf32>,
    return
  }
  func.func @transform_0(%arg0: i32, %arg1: i32) -> (i32, i32) {
    %c0_i32 = arith.constant 0 : i32
    %c0_i32_0 = arith.constant 0 : i32
    return %arg0, %c0_i32 : i32, i32
  }
  func.func @transform_1(%arg0: i32, %arg1: i32) -> (i32, i32) {
    %c0_i32 = arith.constant 0 : i32
    %c0_i32_0 = arith.constant 0 : i32
    %c0_i32_1 = arith.constant 0 : i32
    return %c0_i32, %c0_i32_0 : i32, i32
  }
  func.func @transform_2(%arg0: i32, %arg1: i32) -> (i32, i32) {
    %c0_i32 = arith.constant 0 : i32
    %c0_i32_0 = arith.constant 0 : i32
    return %c0_i32, %arg1 : i32, i32
  }
  func.func @transform_3(%arg0: i32, %arg1: i32) -> (i32, i32) {
    %c0_i32 = arith.constant 0 : i32
    return %arg0, %arg1 : i32, i32
  }
}

module attributes {stable_mosaic.version = 11 : i64} {
  func.func @_attn_kernel(%arg0: i32, %arg1: memref<2x8x96xf32, #tpu.memory_space<vmem>>, %arg2: memref<2x8x32xf32, #tpu.memory_space<vmem>>) attributes {dimension_semantics = [#tpu.dimension_semantics<parallel>], iteration_bounds = array<i64: 1>, scalar_prefetch = 0 : i64, scratch_operands = 0 : i64, tpu.core_type = #tpu.core_type<tc>, window_params = [{transform_indices = @transform_0, window_bounds = array<i64: 2, 8, 96>}, {transform_indices = @transform_1, window_bounds = array<i64: 2, 8, 32>}]} {
    %0 = tpu.iota {dimensions = array<i32: 0>} : vector<8x8xi32>
    %1 = tpu.iota {dimensions = array<i32: 1>} : vector<8x8xi32>
    %2 = arith.cmpi sgt, %1, %0 : vector<8x8xi32>
    %c0 = arith.constant 0 : index
    %c0_0 = arith.constant 0 : index
    %c0_1 = arith.constant 0 : index
    %3 = vector.load %arg1[%c0, %c0_0, %c0_1] : memref<2x8x96xf32, #tpu.memory_space<vmem>>, vector<1x8x96xf32>
    %4 = vector.shape_cast %3 : vector<1x8x96xf32> to vector<8x96xf32>
    %5 = vector.extract_strided_slice %4 {offsets = [0, 0], sizes = [8, 32], strides = [1, 1]} : vector<8x96xf32> to vector<8x32xf32>
    %6 = vector.extract_strided_slice %4 {offsets = [0, 32], sizes = [8, 32], strides = [1, 1]} : vector<8x96xf32> to vector<8x32xf32>
    %7 = vector.extract_strided_slice %4 {offsets = [0, 64], sizes = [8, 32], strides = [1, 1]} : vector<8x96xf32> to vector<8x32xf32>
    %8 = vector.extract_strided_slice %5 {offsets = [0, 0], sizes = [8, 8], strides = [1, 1]} : vector<8x32xf32> to vector<8x8xf32>
    %9 = vector.extract_strided_slice %6 {offsets = [0, 0], sizes = [8, 8], strides = [1, 1]} : vector<8x32xf32> to vector<8x8xf32>
    %10 = vector.extract_strided_slice %7 {offsets = [0, 0], sizes = [8, 8], strides = [1, 1]} : vector<8x32xf32> to vector<8x8xf32>
    %11 = arith.mulf %8, %8 : vector<8x8xf32>
    %cst = arith.constant dense<0.000000e+00> : vector<8xf32>
    %12 = vector.multi_reduction <add>, %11, %cst [1] : vector<8x8xf32> to vector<8xf32>
    %13 = vector.shape_cast %12 : vector<8xf32> to vector<8x1xf32>
    %14 = arith.mulf %9, %9 : vector<8x8xf32>
    %cst_2 = arith.constant dense<0.000000e+00> : vector<8xf32>
    %15 = vector.multi_reduction <add>, %14, %cst_2 [1] : vector<8x8xf32> to vector<8xf32>
    %16 = vector.shape_cast %15 : vector<8xf32> to vector<8x1xf32>
    %17 = arith.truncf %8 : vector<8x8xf32> to vector<8x8xbf16>
    %18 = arith.truncf %9 : vector<8x8xf32> to vector<8x8xbf16>
    %cst_3 = arith.constant dense<0.000000e+00> : vector<8x8xf32>
    %19 = tpu.matmul %17, %18, %cst_3 {dimension_numbers = #tpu.dot_dimension_numbers<[1], [1], [0], [0], [0, 0, 1, 0], [], []>} : vector<8x8xbf16>, vector<8x8xbf16>, vector<8x8xf32> -> vector<8x8xf32>
    %cst_4 = arith.constant 2.000000e+00 : f32
    %20 = vector.broadcast %cst_4 : f32 to vector<8x8xf32>
    %21 = arith.mulf %20, %19 : vector<8x8xf32>
    %22 = vector.broadcast %13 : vector<8x1xf32> to vector<8x8xf32>
    %23 = arith.subf %21, %22 : vector<8x8xf32>
    %24 = tpu.transpose %16, [1, 0] : vector<8x1xf32> -> vector<1x8xf32>
    %25 = vector.broadcast %24 : vector<1x8xf32> to vector<8x8xf32>
    %26 = arith.subf %23, %25 : vector<8x8xf32>
    %cst_5 = arith.constant 0.353553385 : f32
    %27 = vector.broadcast %cst_5 : f32 to vector<8x8xf32>
    %28 = arith.mulf %26, %27 : vector<8x8xf32>
    %cst_6 = arith.constant -3.40282347E+38 : f32
    %29 = vector.broadcast %cst_6 : f32 to vector<8x8xf32>
    %30 = arith.select %2, %29, %28 : vector<8x8xi1>, vector<8x8xf32>
    %cst_7 = arith.constant dense<0xFF800000> : vector<8xf32>
    %31 = vector.multi_reduction <maximumf>, %30, %cst_7 [1] : vector<8x8xf32> to vector<8xf32>
    %32 = vector.shape_cast %31 : vector<8xf32> to vector<8x1xf32>
    %33 = vector.broadcast %32 : vector<8x1xf32> to vector<8x8xf32>
    %34 = arith.subf %30, %33 : vector<8x8xf32>
    %35 = math.exp %34 : vector<8x8xf32>
    %cst_8 = arith.constant dense<0.000000e+00> : vector<8xf32>
    %36 = vector.multi_reduction <add>, %35, %cst_8 [1] : vector<8x8xf32> to vector<8xf32>
    %37 = vector.shape_cast %36 : vector<8xf32> to vector<8x1xf32>
    %38 = tpu.reciprocal %37 {approx = true} : vector<8x1xf32> -> vector<8x1xf32>
    %39 = vector.broadcast %38 : vector<8x1xf32> to vector<8x8xf32>
    %40 = arith.mulf %35, %39 : vector<8x8xf32>
    %41 = arith.truncf %40 : vector<8x8xf32> to vector<8x8xbf16>
    %42 = arith.truncf %10 : vector<8x8xf32> to vector<8x8xbf16>
    %cst_9 = arith.constant dense<0.000000e+00> : vector<8x8xf32>
    %43 = tpu.matmul %41, %42, %cst_9 {dimension_numbers = #tpu.dot_dimension_numbers<[1], [0], [0], [1], [0, 0, 1, 1], [], []>} : vector<8x8xbf16>, vector<8x8xbf16>, vector<8x8xf32> -> vector<8x8xf32>
    %44 = vector.extract_strided_slice %5 {offsets = [0, 8], sizes = [8, 8], strides = [1, 1]} : vector<8x32xf32> to vector<8x8xf32>
    %45 = vector.extract_strided_slice %6 {offsets = [0, 8], sizes = [8, 8], strides = [1, 1]} : vector<8x32xf32> to vector<8x8xf32>
    %46 = vector.extract_strided_slice %7 {offsets = [0, 8], sizes = [8, 8], strides = [1, 1]} : vector<8x32xf32> to vector<8x8xf32>
    %47 = arith.mulf %44, %44 : vector<8x8xf32>
    %cst_10 = arith.constant dense<0.000000e+00> : vector<8xf32>
    %48 = vector.multi_reduction <add>, %47, %cst_10 [1] : vector<8x8xf32> to vector<8xf32>
    %49 = vector.shape_cast %48 : vector<8xf32> to vector<8x1xf32>
    %50 = arith.mulf %45, %45 : vector<8x8xf32>
    %cst_11 = arith.constant dense<0.000000e+00> : vector<8xf32>
    %51 = vector.multi_reduction <add>, %50, %cst_11 [1] : vector<8x8xf32> to vector<8xf32>
    %52 = vector.shape_cast %51 : vector<8xf32> to vector<8x1xf32>
    %53 = arith.truncf %44 : vector<8x8xf32> to vector<8x8xbf16>
    %54 = arith.truncf %45 : vector<8x8xf32> to vector<8x8xbf16>
    %cst_12 = arith.constant dense<0.000000e+00> : vector<8x8xf32>
    %55 = tpu.matmul %53, %54, %cst_12 {dimension_numbers = #tpu.dot_dimension_numbers<[1], [1], [0], [0], [0, 0, 1, 0], [], []>} : vector<8x8xbf16>, vector<8x8xbf16>, vector<8x8xf32> -> vector<8x8xf32>
    %cst_13 = arith.constant 2.000000e+00 : f32
    %56 = vector.broadcast %cst_13 : f32 to vector<8x8xf32>
    %57 = arith.mulf %56, %55 : vector<8x8xf32>
    %58 = vector.broadcast %49 : vector<8x1xf32> to vector<8x8xf32>
    %59 = arith.subf %57, %58 : vector<8x8xf32>
    %60 = tpu.transpose %52, [1, 0] : vector<8x1xf32> -> vector<1x8xf32>
    %61 = vector.broadcast %60 : vector<1x8xf32> to vector<8x8xf32>
    %62 = arith.subf %59, %61 : vector<8x8xf32>
    %cst_14 = arith.constant 0.353553385 : f32
    %63 = vector.broadcast %cst_14 : f32 to vector<8x8xf32>
    %64 = arith.mulf %62, %63 : vector<8x8xf32>
    %cst_15 = arith.constant -3.40282347E+38 : f32
    %65 = vector.broadcast %cst_15 : f32 to vector<8x8xf32>
    %66 = arith.select %2, %65, %64 : vector<8x8xi1>, vector<8x8xf32>
    %cst_16 = arith.constant dense<0xFF800000> : vector<8xf32>
    %67 = vector.multi_reduction <maximumf>, %66, %cst_16 [1] : vector<8x8xf32> to vector<8xf32>
    %68 = vector.shape_cast %67 : vector<8xf32> to vector<8x1xf32>
    %69 = vector.broadcast %68 : vector<8x1xf32> to vector<8x8xf32>
    %70 = arith.subf %66, %69 : vector<8x8xf32>
    %71 = math.exp %70 : vector<8x8xf32>
    %cst_17 = arith.constant dense<0.000000e+00> : vector<8xf32>
    %72 = vector.multi_reduction <add>, %71, %cst_17 [1] : vector<8x8xf32> to vector<8xf32>
    %73 = vector.shape_cast %72 : vector<8xf32> to vector<8x1xf32>
    %74 = tpu.reciprocal %73 {approx = true} : vector<8x1xf32> -> vector<8x1xf32>
    %75 = vector.broadcast %74 : vector<8x1xf32> to vector<8x8xf32>
    %76 = arith.mulf %71, %75 : vector<8x8xf32>
    %77 = arith.truncf %76 : vector<8x8xf32> to vector<8x8xbf16>
    %78 = arith.truncf %46 : vector<8x8xf32> to vector<8x8xbf16>
    %cst_18 = arith.constant dense<0.000000e+00> : vector<8x8xf32>
    %79 = tpu.matmul %77, %78, %cst_18 {dimension_numbers = #tpu.dot_dimension_numbers<[1], [0], [0], [1], [0, 0, 1, 1], [], []>} : vector<8x8xbf16>, vector<8x8xbf16>, vector<8x8xf32> -> vector<8x8xf32>
    %80 = vector.extract_strided_slice %5 {offsets = [0, 16], sizes = [8, 8], strides = [1, 1]} : vector<8x32xf32> to vector<8x8xf32>
    %81 = vector.extract_strided_slice %6 {offsets = [0, 16], sizes = [8, 8], strides = [1, 1]} : vector<8x32xf32> to vector<8x8xf32>
    %82 = vector.extract_strided_slice %7 {offsets = [0, 16], sizes = [8, 8], strides = [1, 1]} : vector<8x32xf32> to vector<8x8xf32>
    %83 = arith.mulf %80, %80 : vector<8x8xf32>
    %cst_19 = arith.constant dense<0.000000e+00> : vector<8xf32>
    %84 = vector.multi_reduction <add>, %83, %cst_19 [1] : vector<8x8xf32> to vector<8xf32>
    %85 = vector.shape_cast %84 : vector<8xf32> to vector<8x1xf32>
    %86 = arith.mulf %81, %81 : vector<8x8xf32>
    %cst_20 = arith.constant dense<0.000000e+00> : vector<8xf32>
    %87 = vector.multi_reduction <add>, %86, %cst_20 [1] : vector<8x8xf32> to vector<8xf32>
    %88 = vector.shape_cast %87 : vector<8xf32> to vector<8x1xf32>
    %89 = arith.truncf %80 : vector<8x8xf32> to vector<8x8xbf16>
    %90 = arith.truncf %81 : vector<8x8xf32> to vector<8x8xbf16>
    %cst_21 = arith.constant dense<0.000000e+00> : vector<8x8xf32>
    %91 = tpu.matmul %89, %90, %cst_21 {dimension_numbers = #tpu.dot_dimension_numbers<[1], [1], [0], [0], [0, 0, 1, 0], [], []>} : vector<8x8xbf16>, vector<8x8xbf16>, vector<8x8xf32> -> vector<8x8xf32>
    %cst_22 = arith.constant 2.000000e+00 : f32
    %92 = vector.broadcast %cst_22 : f32 to vector<8x8xf32>
    %93 = arith.mulf %92, %91 : vector<8x8xf32>
    %94 = vector.broadcast %85 : vector<8x1xf32> to vector<8x8xf32>
    %95 = arith.subf %93, %94 : vector<8x8xf32>
    %96 = tpu.transpose %88, [1, 0] : vector<8x1xf32> -> vector<1x8xf32>
    %97 = vector.broadcast %96 : vector<1x8xf32> to vector<8x8xf32>
    %98 = arith.subf %95, %97 : vector<8x8xf32>
    %cst_23 = arith.constant 0.353553385 : f32
    %99 = vector.broadcast %cst_23 : f32 to vector<8x8xf32>
    %100 = arith.mulf %98, %99 : vector<8x8xf32>
    %cst_24 = arith.constant -3.40282347E+38 : f32
    %101 = vector.broadcast %cst_24 : f32 to vector<8x8xf32>
    %102 = arith.select %2, %101, %100 : vector<8x8xi1>, vector<8x8xf32>
    %cst_25 = arith.constant dense<0xFF800000> : vector<8xf32>
    %103 = vector.multi_reduction <maximumf>, %102, %cst_25 [1] : vector<8x8xf32> to vector<8xf32>
    %104 = vector.shape_cast %103 : vector<8xf32> to vector<8x1xf32>
    %105 = vector.broadcast %104 : vector<8x1xf32> to vector<8x8xf32>
    %106 = arith.subf %102, %105 : vector<8x8xf32>
    %107 = math.exp %106 : vector<8x8xf32>
    %cst_26 = arith.constant dense<0.000000e+00> : vector<8xf32>
    %108 = vector.multi_reduction <add>, %107, %cst_26 [1] : vector<8x8xf32> to vector<8xf32>
    %109 = vector.shape_cast %108 : vector<8xf32> to vector<8x1xf32>
    %110 = tpu.reciprocal %109 {approx = true} : vector<8x1xf32> -> vector<8x1xf32>
    %111 = vector.broadcast %110 : vector<8x1xf32> to vector<8x8xf32>
    %112 = arith.mulf %107, %111 : vector<8x8xf32>
    %113 = arith.truncf %112 : vector<8x8xf32> to vector<8x8xbf16>
    %114 = arith.truncf %82 : vector<8x8xf32> to vector<8x8xbf16>
    %cst_27 = arith.constant dense<0.000000e+00> : vector<8x8xf32>
    %115 = tpu.matmul %113, %114, %cst_27 {dimension_numbers = #tpu.dot_dimension_numbers<[1], [0], [0], [1], [0, 0, 1, 1], [], []>} : vector<8x8xbf16>, vector<8x8xbf16>, vector<8x8xf32> -> vector<8x8xf32>
    %116 = vector.extract_strided_slice %5 {offsets = [0, 24], sizes = [8, 8], strides = [1, 1]} : vector<8x32xf32> to vector<8x8xf32>
    %117 = vector.extract_strided_slice %6 {offsets = [0, 24], sizes = [8, 8], strides = [1, 1]} : vector<8x32xf32> to vector<8x8xf32>
    %118 = vector.extract_strided_slice %7 {offsets = [0, 24], sizes = [8, 8], strides = [1, 1]} : vector<8x32xf32> to vector<8x8xf32>
    %119 = arith.mulf %116, %116 : vector<8x8xf32>
    %cst_28 = arith.constant dense<0.000000e+00> : vector<8xf32>
    %120 = vector.multi_reduction <add>, %119, %cst_28 [1] : vector<8x8xf32> to vector<8xf32>
    %121 = vector.shape_cast %120 : vector<8xf32> to vector<8x1xf32>
    %122 = arith.mulf %117, %117 : vector<8x8xf32>
    %cst_29 = arith.constant dense<0.000000e+00> : vector<8xf32>
    %123 = vector.multi_reduction <add>, %122, %cst_29 [1] : vector<8x8xf32> to vector<8xf32>
    %124 = vector.shape_cast %123 : vector<8xf32> to vector<8x1xf32>
    %125 = arith.truncf %116 : vector<8x8xf32> to vector<8x8xbf16>
    %126 = arith.truncf %117 : vector<8x8xf32> to vector<8x8xbf16>
    %cst_30 = arith.constant dense<0.000000e+00> : vector<8x8xf32>
    %127 = tpu.matmul %125, %126, %cst_30 {dimension_numbers = #tpu.dot_dimension_numbers<[1], [1], [0], [0], [0, 0, 1, 0], [], []>} : vector<8x8xbf16>, vector<8x8xbf16>, vector<8x8xf32> -> vector<8x8xf32>
    %cst_31 = arith.constant 2.000000e+00 : f32
    %128 = vector.broadcast %cst_31 : f32 to vector<8x8xf32>
    %129 = arith.mulf %128, %127 : vector<8x8xf32>
    %130 = vector.broadcast %121 : vector<8x1xf32> to vector<8x8xf32>
    %131 = arith.subf %129, %130 : vector<8x8xf32>
    %132 = tpu.transpose %124, [1, 0] : vector<8x1xf32> -> vector<1x8xf32>
    %133 = vector.broadcast %132 : vector<1x8xf32> to vector<8x8xf32>
    %134 = arith.subf %131, %133 : vector<8x8xf32>
    %cst_32 = arith.constant 0.353553385 : f32
    %135 = vector.broadcast %cst_32 : f32 to vector<8x8xf32>
    %136 = arith.mulf %134, %135 : vector<8x8xf32>
    %cst_33 = arith.constant -3.40282347E+38 : f32
    %137 = vector.broadcast %cst_33 : f32 to vector<8x8xf32>
    %138 = arith.select %2, %137, %136 : vector<8x8xi1>, vector<8x8xf32>
    %cst_34 = arith.constant dense<0xFF800000> : vector<8xf32>
    %139 = vector.multi_reduction <maximumf>, %138, %cst_34 [1] : vector<8x8xf32> to vector<8xf32>
    %140 = vector.shape_cast %139 : vector<8xf32> to vector<8x1xf32>
    %141 = vector.broadcast %140 : vector<8x1xf32> to vector<8x8xf32>
    %142 = arith.subf %138, %141 : vector<8x8xf32>
    %143 = math.exp %142 : vector<8x8xf32>
    %cst_35 = arith.constant dense<0.000000e+00> : vector<8xf32>
    %144 = vector.multi_reduction <add>, %143, %cst_35 [1] : vector<8x8xf32> to vector<8xf32>
    %145 = vector.shape_cast %144 : vector<8xf32> to vector<8x1xf32>
    %146 = tpu.reciprocal %145 {approx = true} : vector<8x1xf32> -> vector<8x1xf32>
    %147 = vector.broadcast %146 : vector<8x1xf32> to vector<8x8xf32>
    %148 = arith.mulf %143, %147 : vector<8x8xf32>
    %149 = arith.truncf %148 : vector<8x8xf32> to vector<8x8xbf16>
    %150 = arith.truncf %118 : vector<8x8xf32> to vector<8x8xbf16>
    %cst_36 = arith.constant dense<0.000000e+00> : vector<8x8xf32>
    %151 = tpu.matmul %149, %150, %cst_36 {dimension_numbers = #tpu.dot_dimension_numbers<[1], [0], [0], [1], [0, 0, 1, 1], [], []>} : vector<8x8xbf16>, vector<8x8xbf16>, vector<8x8xf32> -> vector<8x8xf32>
    %152 = tpu.concatenate %43, %79, %115, %151 in 1 : vector<8x8xf32>, vector<8x8xf32>, vector<8x8xf32>, vector<8x8xf32> -> vector<8x32xf32>
    %c0_37 = arith.constant 0 : index
    %c0_38 = arith.constant 0 : index
    %c0_39 = arith.constant 0 : index
    %153 = vector.load %arg2[%c0_37, %c0_38, %c0_39] : memref<2x8x32xf32, #tpu.memory_space<vmem>>, vector<1x8x32xf32>
    %154 = vector.shape_cast %153 : vector<1x8x32xf32> to vector<8x32xf32>
    %155 = vector.shape_cast %152 : vector<8x32xf32> to vector<1x8x32xf32>
    tpu.vector_store %arg2[%c0_37, %c0_38, %c0_39], %155 {strides = array<i32>} : memref<2x8x32xf32, #tpu.memory_space<vmem>>, vector<1x8x32xf32>,
    %c1 = arith.constant 1 : index
    %c0_40 = arith.constant 0 : index
    %c0_41 = arith.constant 0 : index
    %156 = vector.load %arg1[%c1, %c0_40, %c0_41] : memref<2x8x96xf32, #tpu.memory_space<vmem>>, vector<1x8x96xf32>
    %157 = vector.shape_cast %156 : vector<1x8x96xf32> to vector<8x96xf32>
    %158 = vector.extract_strided_slice %157 {offsets = [0, 0], sizes = [8, 32], strides = [1, 1]} : vector<8x96xf32> to vector<8x32xf32>
    %159 = vector.extract_strided_slice %157 {offsets = [0, 32], sizes = [8, 32], strides = [1, 1]} : vector<8x96xf32> to vector<8x32xf32>
    %160 = vector.extract_strided_slice %157 {offsets = [0, 64], sizes = [8, 32], strides = [1, 1]} : vector<8x96xf32> to vector<8x32xf32>
    %161 = vector.extract_strided_slice %158 {offsets = [0, 0], sizes = [8, 8], strides = [1, 1]} : vector<8x32xf32> to vector<8x8xf32>
    %162 = vector.extract_strided_slice %159 {offsets = [0, 0], sizes = [8, 8], strides = [1, 1]} : vector<8x32xf32> to vector<8x8xf32>
    %163 = vector.extract_strided_slice %160 {offsets = [0, 0], sizes = [8, 8], strides = [1, 1]} : vector<8x32xf32> to vector<8x8xf32>
    %164 = arith.mulf %161, %161 : vector<8x8xf32>
    %cst_42 = arith.constant dense<0.000000e+00> : vector<8xf32>
    %165 = vector.multi_reduction <add>, %164, %cst_42 [1] : vector<8x8xf32> to vector<8xf32>
    %166 = vector.shape_cast %165 : vector<8xf32> to vector<8x1xf32>
    %167 = arith.mulf %162, %162 : vector<8x8xf32>
    %cst_43 = arith.constant dense<0.000000e+00> : vector<8xf32>
    %168 = vector.multi_reduction <add>, %167, %cst_43 [1] : vector<8x8xf32> to vector<8xf32>
    %169 = vector.shape_cast %168 : vector<8xf32> to vector<8x1xf32>
    %170 = arith.truncf %161 : vector<8x8xf32> to vector<8x8xbf16>
    %171 = arith.truncf %162 : vector<8x8xf32> to vector<8x8xbf16>
    %cst_44 = arith.constant dense<0.000000e+00> : vector<8x8xf32>
    %172 = tpu.matmul %170, %171, %cst_44 {dimension_numbers = #tpu.dot_dimension_numbers<[1], [1], [0], [0], [0, 0, 1, 0], [], []>} : vector<8x8xbf16>, vector<8x8xbf16>, vector<8x8xf32> -> vector<8x8xf32>
    %cst_45 = arith.constant 2.000000e+00 : f32
    %173 = vector.broadcast %cst_45 : f32 to vector<8x8xf32>
    %174 = arith.mulf %173, %172 : vector<8x8xf32>
    %175 = vector.broadcast %166 : vector<8x1xf32> to vector<8x8xf32>
    %176 = arith.subf %174, %175 : vector<8x8xf32>
    %177 = tpu.transpose %169, [1, 0] : vector<8x1xf32> -> vector<1x8xf32>
    %178 = vector.broadcast %177 : vector<1x8xf32> to vector<8x8xf32>
    %179 = arith.subf %176, %178 : vector<8x8xf32>
    %cst_46 = arith.constant 0.353553385 : f32
    %180 = vector.broadcast %cst_46 : f32 to vector<8x8xf32>
    %181 = arith.mulf %179, %180 : vector<8x8xf32>
    %cst_47 = arith.constant -3.40282347E+38 : f32
    %182 = vector.broadcast %cst_47 : f32 to vector<8x8xf32>
    %183 = arith.select %2, %182, %181 : vector<8x8xi1>, vector<8x8xf32>
    %cst_48 = arith.constant dense<0xFF800000> : vector<8xf32>
    %184 = vector.multi_reduction <maximumf>, %183, %cst_48 [1] : vector<8x8xf32> to vector<8xf32>
    %185 = vector.shape_cast %184 : vector<8xf32> to vector<8x1xf32>
    %186 = vector.broadcast %185 : vector<8x1xf32> to vector<8x8xf32>
    %187 = arith.subf %183, %186 : vector<8x8xf32>
    %188 = math.exp %187 : vector<8x8xf32>
    %cst_49 = arith.constant dense<0.000000e+00> : vector<8xf32>
    %189 = vector.multi_reduction <add>, %188, %cst_49 [1] : vector<8x8xf32> to vector<8xf32>
    %190 = vector.shape_cast %189 : vector<8xf32> to vector<8x1xf32>
    %191 = tpu.reciprocal %190 {approx = true} : vector<8x1xf32> -> vector<8x1xf32>
    %192 = vector.broadcast %191 : vector<8x1xf32> to vector<8x8xf32>
    %193 = arith.mulf %188, %192 : vector<8x8xf32>
    %194 = arith.truncf %193 : vector<8x8xf32> to vector<8x8xbf16>
    %195 = arith.truncf %163 : vector<8x8xf32> to vector<8x8xbf16>
    %cst_50 = arith.constant dense<0.000000e+00> : vector<8x8xf32>
    %196 = tpu.matmul %194, %195, %cst_50 {dimension_numbers = #tpu.dot_dimension_numbers<[1], [0], [0], [1], [0, 0, 1, 1], [], []>} : vector<8x8xbf16>, vector<8x8xbf16>, vector<8x8xf32> -> vector<8x8xf32>
    %197 = vector.extract_strided_slice %158 {offsets = [0, 8], sizes = [8, 8], strides = [1, 1]} : vector<8x32xf32> to vector<8x8xf32>
    %198 = vector.extract_strided_slice %159 {offsets = [0, 8], sizes = [8, 8], strides = [1, 1]} : vector<8x32xf32> to vector<8x8xf32>
    %199 = vector.extract_strided_slice %160 {offsets = [0, 8], sizes = [8, 8], strides = [1, 1]} : vector<8x32xf32> to vector<8x8xf32>
    %200 = arith.mulf %197, %197 : vector<8x8xf32>
    %cst_51 = arith.constant dense<0.000000e+00> : vector<8xf32>
    %201 = vector.multi_reduction <add>, %200, %cst_51 [1] : vector<8x8xf32> to vector<8xf32>
    %202 = vector.shape_cast %201 : vector<8xf32> to vector<8x1xf32>
    %203 = arith.mulf %198, %198 : vector<8x8xf32>
    %cst_52 = arith.constant dense<0.000000e+00> : vector<8xf32>
    %204 = vector.multi_reduction <add>, %203, %cst_52 [1] : vector<8x8xf32> to vector<8xf32>
    %205 = vector.shape_cast %204 : vector<8xf32> to vector<8x1xf32>
    %206 = arith.truncf %197 : vector<8x8xf32> to vector<8x8xbf16>
    %207 = arith.truncf %198 : vector<8x8xf32> to vector<8x8xbf16>
    %cst_53 = arith.constant dense<0.000000e+00> : vector<8x8xf32>
    %208 = tpu.matmul %206, %207, %cst_53 {dimension_numbers = #tpu.dot_dimension_numbers<[1], [1], [0], [0], [0, 0, 1, 0], [], []>} : vector<8x8xbf16>, vector<8x8xbf16>, vector<8x8xf32> -> vector<8x8xf32>
    %cst_54 = arith.constant 2.000000e+00 : f32
    %209 = vector.broadcast %cst_54 : f32 to vector<8x8xf32>
    %210 = arith.mulf %209, %208 : vector<8x8xf32>
    %211 = vector.broadcast %202 : vector<8x1xf32> to vector<8x8xf32>
    %212 = arith.subf %210, %211 : vector<8x8xf32>
    %213 = tpu.transpose %205, [1, 0] : vector<8x1xf32> -> vector<1x8xf32>
    %214 = vector.broadcast %213 : vector<1x8xf32> to vector<8x8xf32>
    %215 = arith.subf %212, %214 : vector<8x8xf32>
    %cst_55 = arith.constant 0.353553385 : f32
    %216 = vector.broadcast %cst_55 : f32 to vector<8x8xf32>
    %217 = arith.mulf %215, %216 : vector<8x8xf32>
    %cst_56 = arith.constant -3.40282347E+38 : f32
    %218 = vector.broadcast %cst_56 : f32 to vector<8x8xf32>
    %219 = arith.select %2, %218, %217 : vector<8x8xi1>, vector<8x8xf32>
    %cst_57 = arith.constant dense<0xFF800000> : vector<8xf32>
    %220 = vector.multi_reduction <maximumf>, %219, %cst_57 [1] : vector<8x8xf32> to vector<8xf32>
    %221 = vector.shape_cast %220 : vector<8xf32> to vector<8x1xf32>
    %222 = vector.broadcast %221 : vector<8x1xf32> to vector<8x8xf32>
    %223 = arith.subf %219, %222 : vector<8x8xf32>
    %224 = math.exp %223 : vector<8x8xf32>
    %cst_58 = arith.constant dense<0.000000e+00> : vector<8xf32>
    %225 = vector.multi_reduction <add>, %224, %cst_58 [1] : vector<8x8xf32> to vector<8xf32>
    %226 = vector.shape_cast %225 : vector<8xf32> to vector<8x1xf32>
    %227 = tpu.reciprocal %226 {approx = true} : vector<8x1xf32> -> vector<8x1xf32>
    %228 = vector.broadcast %227 : vector<8x1xf32> to vector<8x8xf32>
    %229 = arith.mulf %224, %228 : vector<8x8xf32>
    %230 = arith.truncf %229 : vector<8x8xf32> to vector<8x8xbf16>
    %231 = arith.truncf %199 : vector<8x8xf32> to vector<8x8xbf16>
    %cst_59 = arith.constant dense<0.000000e+00> : vector<8x8xf32>
    %232 = tpu.matmul %230, %231, %cst_59 {dimension_numbers = #tpu.dot_dimension_numbers<[1], [0], [0], [1], [0, 0, 1, 1], [], []>} : vector<8x8xbf16>, vector<8x8xbf16>, vector<8x8xf32> -> vector<8x8xf32>
    %233 = vector.extract_strided_slice %158 {offsets = [0, 16], sizes = [8, 8], strides = [1, 1]} : vector<8x32xf32> to vector<8x8xf32>
    %234 = vector.extract_strided_slice %159 {offsets = [0, 16], sizes = [8, 8], strides = [1, 1]} : vector<8x32xf32> to vector<8x8xf32>
    %235 = vector.extract_strided_slice %160 {offsets = [0, 16], sizes = [8, 8], strides = [1, 1]} : vector<8x32xf32> to vector<8x8xf32>
    %236 = arith.mulf %233, %233 : vector<8x8xf32>
    %cst_60 = arith.constant dense<0.000000e+00> : vector<8xf32>
    %237 = vector.multi_reduction <add>, %236, %cst_60 [1] : vector<8x8xf32> to vector<8xf32>
    %238 = vector.shape_cast %237 : vector<8xf32> to vector<8x1xf32>
    %239 = arith.mulf %234, %234 : vector<8x8xf32>
    %cst_61 = arith.constant dense<0.000000e+00> : vector<8xf32>
    %240 = vector.multi_reduction <add>, %239, %cst_61 [1] : vector<8x8xf32> to vector<8xf32>
    %241 = vector.shape_cast %240 : vector<8xf32> to vector<8x1xf32>
    %242 = arith.truncf %233 : vector<8x8xf32> to vector<8x8xbf16>
    %243 = arith.truncf %234 : vector<8x8xf32> to vector<8x8xbf16>
    %cst_62 = arith.constant dense<0.000000e+00> : vector<8x8xf32>
    %244 = tpu.matmul %242, %243, %cst_62 {dimension_numbers = #tpu.dot_dimension_numbers<[1], [1], [0], [0], [0, 0, 1, 0], [], []>} : vector<8x8xbf16>, vector<8x8xbf16>, vector<8x8xf32> -> vector<8x8xf32>
    %cst_63 = arith.constant 2.000000e+00 : f32
    %245 = vector.broadcast %cst_63 : f32 to vector<8x8xf32>
    %246 = arith.mulf %245, %244 : vector<8x8xf32>
    %247 = vector.broadcast %238 : vector<8x1xf32> to vector<8x8xf32>
    %248 = arith.subf %246, %247 : vector<8x8xf32>
    %249 = tpu.transpose %241, [1, 0] : vector<8x1xf32> -> vector<1x8xf32>
    %250 = vector.broadcast %249 : vector<1x8xf32> to vector<8x8xf32>
    %251 = arith.subf %248, %250 : vector<8x8xf32>
    %cst_64 = arith.constant 0.353553385 : f32
    %252 = vector.broadcast %cst_64 : f32 to vector<8x8xf32>
    %253 = arith.mulf %251, %252 : vector<8x8xf32>
    %cst_65 = arith.constant -3.40282347E+38 : f32
    %254 = vector.broadcast %cst_65 : f32 to vector<8x8xf32>
    %255 = arith.select %2, %254, %253 : vector<8x8xi1>, vector<8x8xf32>
    %cst_66 = arith.constant dense<0xFF800000> : vector<8xf32>
    %256 = vector.multi_reduction <maximumf>, %255, %cst_66 [1] : vector<8x8xf32> to vector<8xf32>
    %257 = vector.shape_cast %256 : vector<8xf32> to vector<8x1xf32>
    %258 = vector.broadcast %257 : vector<8x1xf32> to vector<8x8xf32>
    %259 = arith.subf %255, %258 : vector<8x8xf32>
    %260 = math.exp %259 : vector<8x8xf32>
    %cst_67 = arith.constant dense<0.000000e+00> : vector<8xf32>
    %261 = vector.multi_reduction <add>, %260, %cst_67 [1] : vector<8x8xf32> to vector<8xf32>
    %262 = vector.shape_cast %261 : vector<8xf32> to vector<8x1xf32>
    %263 = tpu.reciprocal %262 {approx = true} : vector<8x1xf32> -> vector<8x1xf32>
    %264 = vector.broadcast %263 : vector<8x1xf32> to vector<8x8xf32>
    %265 = arith.mulf %260, %264 : vector<8x8xf32>
    %266 = arith.truncf %265 : vector<8x8xf32> to vector<8x8xbf16>
    %267 = arith.truncf %235 : vector<8x8xf32> to vector<8x8xbf16>
    %cst_68 = arith.constant dense<0.000000e+00> : vector<8x8xf32>
    %268 = tpu.matmul %266, %267, %cst_68 {dimension_numbers = #tpu.dot_dimension_numbers<[1], [0], [0], [1], [0, 0, 1, 1], [], []>} : vector<8x8xbf16>, vector<8x8xbf16>, vector<8x8xf32> -> vector<8x8xf32>
    %269 = vector.extract_strided_slice %158 {offsets = [0, 24], sizes = [8, 8], strides = [1, 1]} : vector<8x32xf32> to vector<8x8xf32>
    %270 = vector.extract_strided_slice %159 {offsets = [0, 24], sizes = [8, 8], strides = [1, 1]} : vector<8x32xf32> to vector<8x8xf32>
    %271 = vector.extract_strided_slice %160 {offsets = [0, 24], sizes = [8, 8], strides = [1, 1]} : vector<8x32xf32> to vector<8x8xf32>
    %272 = arith.mulf %269, %269 : vector<8x8xf32>
    %cst_69 = arith.constant dense<0.000000e+00> : vector<8xf32>
    %273 = vector.multi_reduction <add>, %272, %cst_69 [1] : vector<8x8xf32> to vector<8xf32>
    %274 = vector.shape_cast %273 : vector<8xf32> to vector<8x1xf32>
    %275 = arith.mulf %270, %270 : vector<8x8xf32>
    %cst_70 = arith.constant dense<0.000000e+00> : vector<8xf32>
    %276 = vector.multi_reduction <add>, %275, %cst_70 [1] : vector<8x8xf32> to vector<8xf32>
    %277 = vector.shape_cast %276 : vector<8xf32> to vector<8x1xf32>
    %278 = arith.truncf %269 : vector<8x8xf32> to vector<8x8xbf16>
    %279 = arith.truncf %270 : vector<8x8xf32> to vector<8x8xbf16>
    %cst_71 = arith.constant dense<0.000000e+00> : vector<8x8xf32>
    %280 = tpu.matmul %278, %279, %cst_71 {dimension_numbers = #tpu.dot_dimension_numbers<[1], [1], [0], [0], [0, 0, 1, 0], [], []>} : vector<8x8xbf16>, vector<8x8xbf16>, vector<8x8xf32> -> vector<8x8xf32>
    %cst_72 = arith.constant 2.000000e+00 : f32
    %281 = vector.broadcast %cst_72 : f32 to vector<8x8xf32>
    %282 = arith.mulf %281, %280 : vector<8x8xf32>
    %283 = vector.broadcast %274 : vector<8x1xf32> to vector<8x8xf32>
    %284 = arith.subf %282, %283 : vector<8x8xf32>
    %285 = tpu.transpose %277, [1, 0] : vector<8x1xf32> -> vector<1x8xf32>
    %286 = vector.broadcast %285 : vector<1x8xf32> to vector<8x8xf32>
    %287 = arith.subf %284, %286 : vector<8x8xf32>
    %cst_73 = arith.constant 0.353553385 : f32
    %288 = vector.broadcast %cst_73 : f32 to vector<8x8xf32>
    %289 = arith.mulf %287, %288 : vector<8x8xf32>
    %cst_74 = arith.constant -3.40282347E+38 : f32
    %290 = vector.broadcast %cst_74 : f32 to vector<8x8xf32>
    %291 = arith.select %2, %290, %289 : vector<8x8xi1>, vector<8x8xf32>
    %cst_75 = arith.constant dense<0xFF800000> : vector<8xf32>
    %292 = vector.multi_reduction <maximumf>, %291, %cst_75 [1] : vector<8x8xf32> to vector<8xf32>
    %293 = vector.shape_cast %292 : vector<8xf32> to vector<8x1xf32>
    %294 = vector.broadcast %293 : vector<8x1xf32> to vector<8x8xf32>
    %295 = arith.subf %291, %294 : vector<8x8xf32>
    %296 = math.exp %295 : vector<8x8xf32>
    %cst_76 = arith.constant dense<0.000000e+00> : vector<8xf32>
    %297 = vector.multi_reduction <add>, %296, %cst_76 [1] : vector<8x8xf32> to vector<8xf32>
    %298 = vector.shape_cast %297 : vector<8xf32> to vector<8x1xf32>
    %299 = tpu.reciprocal %298 {approx = true} : vector<8x1xf32> -> vector<8x1xf32>
    %300 = vector.broadcast %299 : vector<8x1xf32> to vector<8x8xf32>
    %301 = arith.mulf %296, %300 : vector<8x8xf32>
    %302 = arith.truncf %301 : vector<8x8xf32> to vector<8x8xbf16>
    %303 = arith.truncf %271 : vector<8x8xf32> to vector<8x8xbf16>
    %cst_77 = arith.constant dense<0.000000e+00> : vector<8x8xf32>
    %304 = tpu.matmul %302, %303, %cst_77 {dimension_numbers = #tpu.dot_dimension_numbers<[1], [0], [0], [1], [0, 0, 1, 1], [], []>} : vector<8x8xbf16>, vector<8x8xbf16>, vector<8x8xf32> -> vector<8x8xf32>
    %305 = tpu.concatenate %196, %232, %268, %304 in 1 : vector<8x8xf32>, vector<8x8xf32>, vector<8x8xf32>, vector<8x8xf32> -> vector<8x32xf32>
    %c1_78 = arith.constant 1 : index
    %c0_79 = arith.constant 0 : index
    %c0_80 = arith.constant 0 : index
    %306 = vector.load %arg2[%c1_78, %c0_79, %c0_80] : memref<2x8x32xf32, #tpu.memory_space<vmem>>, vector<1x8x32xf32>
    %307 = vector.shape_cast %306 : vector<1x8x32xf32> to vector<8x32xf32>
    %308 = vector.shape_cast %305 : vector<8x32xf32> to vector<1x8x32xf32>
    tpu.vector_store %arg2[%c1_78, %c0_79, %c0_80], %308 {strides = array<i32>} : memref<2x8x32xf32, #tpu.memory_space<vmem>>, vector<1x8x32xf32>,
    return
  }
  func.func @transform_0(%arg0: i32) -> (i32, i32, i32) {
    %c0_i32 = arith.constant 0 : i32
    %c0_i32_0 = arith.constant 0 : i32
    %c0_i32_1 = arith.constant 0 : i32
    return %arg0, %c0_i32, %c0_i32_0 : i32, i32, i32
  }
  func.func @transform_1(%arg0: i32) -> (i32, i32, i32) {
    %c0_i32 = arith.constant 0 : i32
    %c0_i32_0 = arith.constant 0 : i32
    %c0_i32_1 = arith.constant 0 : i32
    return %arg0, %c0_i32, %c0_i32_0 : i32, i32, i32
  }
}

module attributes {stable_mosaic.version = 11 : i64} {
  func.func @_norm_linear_l2_kernel(%arg0: i32, %arg1: i32, %arg2: memref<16x32xf32, #tpu.memory_space<vmem>>, %arg3: memref<1x32xf32, #tpu.memory_space<vmem>>, %arg4: memref<32x128xbf16, #tpu.memory_space<vmem>>, %arg5: memref<1x128xf32, #tpu.memory_space<vmem>>, %arg6: memref<16x128xf32, #tpu.memory_space<vmem>>) attributes {dimension_semantics = [#tpu.dimension_semantics<parallel>, #tpu.dimension_semantics<parallel>], iteration_bounds = array<i64: 1, 1>, scalar_prefetch = 0 : i64, scratch_operands = 0 : i64, tpu.core_type = #tpu.core_type<tc>, window_params = [{transform_indices = @transform_0, window_bounds = array<i64: 16, 32>}, {pipeline_mode = #tpu.pipeline_mode<synchronous>, transform_indices = @transform_1, window_bounds = array<i64: 1, 32>}, {transform_indices = @transform_2, window_bounds = array<i64: 32, 128>}, {transform_indices = @transform_3, window_bounds = array<i64: 1, 128>}, {transform_indices = @transform_4, window_bounds = array<i64: 16, 128>}]} {
    %c0 = arith.constant 0 : index
    %c0_0 = arith.constant 0 : index
    %0 = vector.load %arg2[%c0, %c0_0] : memref<16x32xf32, #tpu.memory_space<vmem>>, vector<16x32xf32>
    %1 = arith.mulf %0, %0 : vector<16x32xf32>
    %cst = arith.constant dense<0.000000e+00> : vector<16xf32>
    %2 = vector.multi_reduction <add>, %1, %cst [1] : vector<16x32xf32> to vector<16xf32>
    %3 = vector.shape_cast %2 : vector<16xf32> to vector<16x1xf32>
    %cst_1 = arith.constant 1.000000e-24 : f32
    %4 = vector.broadcast %cst_1 : f32 to vector<16x1xf32>
    %5 = arith.maximumf %3, %4 : vector<16x1xf32>
    %6 = math.rsqrt %5 : vector<16x1xf32>
    %7 = vector.broadcast %6 : vector<16x1xf32> to vector<16x32xf32>
    %8 = arith.mulf %0, %7 : vector<16x32xf32>
    %cst_2 = arith.constant 5.65685415 : f32
    %9 = vector.broadcast %cst_2 : f32 to vector<16x32xf32>
    %10 = arith.mulf %8, %9 : vector<16x32xf32>
    %c0_3 = arith.constant 0 : index
    %c0_4 = arith.constant 0 : index
    %11 = vector.load %arg3[%c0_3, %c0_4] : memref<1x32xf32, #tpu.memory_space<vmem>>, vector<1x32xf32>
    %cst_5 = arith.constant 1.000000e+00 : f32
    %12 = vector.broadcast %cst_5 : f32 to vector<1x32xf32>
    %13 = arith.addf %11, %12 : vector<1x32xf32>
    %14 = vector.broadcast %13 : vector<1x32xf32> to vector<16x32xf32>
    %15 = arith.mulf %10, %14 : vector<16x32xf32>
    %16 = arith.truncf %15 : vector<16x32xf32> to vector<16x32xbf16>
    %c0_6 = arith.constant 0 : index
    %c0_7 = arith.constant 0 : index
    %17 = vector.load %arg4[%c0_6, %c0_7] : memref<32x128xbf16, #tpu.memory_space<vmem>>, vector<32x128xbf16>
    %cst_8 = arith.constant dense<0.000000e+00> : vector<16x128xf32>
    %18 = tpu.matmul %16, %17, %cst_8 {dimension_numbers = #tpu.dot_dimension_numbers<[1], [0], [0], [1], [0, 0, 1, 1], [], []>} : vector<16x32xbf16>, vector<32x128xbf16>, vector<16x128xf32> -> vector<16x128xf32>
    %19 = arith.mulf %15, %15 : vector<16x32xf32>
    %cst_9 = arith.constant dense<0.000000e+00> : vector<16xf32>
    %20 = vector.multi_reduction <add>, %19, %cst_9 [1] : vector<16x32xf32> to vector<16xf32>
    %21 = vector.shape_cast %20 : vector<16xf32> to vector<16x1xf32>
    %cst_10 = arith.constant 2.000000e+00 : f32
    %22 = vector.broadcast %cst_10 : f32 to vector<16x128xf32>
    %23 = arith.mulf %22, %18 : vector<16x128xf32>
    %24 = vector.broadcast %21 : vector<16x1xf32> to vector<16x128xf32>
    %25 = arith.subf %23, %24 : vector<16x128xf32>
    %c0_11 = arith.constant 0 : index
    %c0_12 = arith.constant 0 : index
    %26 = vector.load %arg5[%c0_11, %c0_12] : memref<1x128xf32, #tpu.memory_space<vmem>>, vector<1x128xf32>
    %27 = vector.broadcast %26 : vector<1x128xf32> to vector<16x128xf32>
    %28 = arith.addf %25, %27 : vector<16x128xf32>
    %c0_13 = arith.constant 0 : index
    %c0_14 = arith.constant 0 : index
    %29 = vector.load %arg6[%c0_13, %c0_14] : memref<16x128xf32, #tpu.memory_space<vmem>>, vector<16x128xf32>
    tpu.vector_store %arg6[%c0_13, %c0_14], %28 {strides = array<i32>} : memref<16x128xf32, #tpu.memory_space<vmem>>, vector<16x128xf32>,
    return
  }
  func.func @transform_0(%arg0: i32, %arg1: i32) -> (i32, i32) {
    %c0_i32 = arith.constant 0 : i32
    %c0_i32_0 = arith.constant 0 : i32
    return %arg0, %c0_i32 : i32, i32
  }
  func.func @transform_1(%arg0: i32, %arg1: i32) -> (i32, i32) {
    %c0_i32 = arith.constant 0 : i32
    %c0_i32_0 = arith.constant 0 : i32
    %c0_i32_1 = arith.constant 0 : i32
    return %c0_i32, %c0_i32_0 : i32, i32
  }
  func.func @transform_2(%arg0: i32, %arg1: i32) -> (i32, i32) {
    %c0_i32 = arith.constant 0 : i32
    %c0_i32_0 = arith.constant 0 : i32
    return %c0_i32, %arg1 : i32, i32
  }
  func.func @transform_3(%arg0: i32, %arg1: i32) -> (i32, i32) {
    %c0_i32 = arith.constant 0 : i32
    %c0_i32_0 = arith.constant 0 : i32
    return %c0_i32, %arg1 : i32, i32
  }
  func.func @transform_4(%arg0: i32, %arg1: i32) -> (i32, i32) {
    %c0_i32 = arith.constant 0 : i32
    return %arg0, %arg1 : i32, i32
  }
}

module attributes {stable_mosaic.version = 11 : i64} {
  func.func @_linear_residual_kernel(%arg0: i32, %arg1: i32, %arg2: i32, %arg3: memref<16x128xf32, #tpu.memory_space<vmem>>, %arg4: memref<128x32xbf16, #tpu.memory_space<vmem>>, %arg5: memref<16x32xf32, #tpu.memory_space<vmem>>, %arg6: memref<16x32xf32, #tpu.memory_space<vmem>>, %arg7: memref<16x32xf32, #tpu.memory_space<vmem>>) attributes {dimension_semantics = [#tpu.dimension_semantics<parallel>, #tpu.dimension_semantics<parallel>, #tpu.dimension_semantics<arbitrary>], iteration_bounds = array<i64: 1, 1, 1>, scalar_prefetch = 0 : i64, scratch_operands = 1 : i64, tpu.core_type = #tpu.core_type<tc>, window_params = [{transform_indices = @transform_0, window_bounds = array<i64: 16, 128>}, {transform_indices = @transform_1, window_bounds = array<i64: 128, 32>}, {transform_indices = @transform_2, window_bounds = array<i64: 16, 32>}, {transform_indices = @transform_3, window_bounds = array<i64: 16, 32>}]} {
    %c0_i32 = arith.constant 0 : i32
    %0 = arith.cmpi eq, %arg2, %c0_i32 : i32
    %1 = arith.extui %0 : i1 to i32
    %c0_i32_0 = arith.constant 0 : i32
    %2 = arith.cmpi ne, %1, %c0_i32_0 : i32
    scf.if %2 {
      %cst_10 = arith.constant 0.000000e+00 : f32
      %13 = vector.broadcast %cst_10 : f32 to vector<16x32xf32>
      %c0_11 = arith.constant 0 : index
      %c0_12 = arith.constant 0 : index
      %14 = vector.load %arg7[%c0_11, %c0_12] : memref<16x32xf32, #tpu.memory_space<vmem>>, vector<16x32xf32>
      tpu.vector_store %arg7[%c0_11, %c0_12], %13 {strides = array<i32>} : memref<16x32xf32, #tpu.memory_space<vmem>>, vector<16x32xf32>,
    } else {
    }
    %c0 = arith.constant 0 : index
    %c0_1 = arith.constant 0 : index
    %3 = vector.load %arg7[%c0, %c0_1] : memref<16x32xf32, #tpu.memory_space<vmem>>, vector<16x32xf32>
    %c0_2 = arith.constant 0 : index
    %c0_3 = arith.constant 0 : index
    %4 = vector.load %arg3[%c0_2, %c0_3] : memref<16x128xf32, #tpu.memory_space<vmem>>, vector<16x128xf32>
    %5 = arith.truncf %4 : vector<16x128xf32> to vector<16x128xbf16>
    %c0_4 = arith.constant 0 : index
    %c0_5 = arith.constant 0 : index
    %6 = vector.load %arg4[%c0_4, %c0_5] : memref<128x32xbf16, #tpu.memory_space<vmem>>, vector<128x32xbf16>
    %cst = arith.constant dense<0.000000e+00> : vector<16x32xf32>
    %7 = tpu.matmul %5, %6, %cst {dimension_numbers = #tpu.dot_dimension_numbers<[1], [0], [0], [1], [0, 0, 1, 1], [], []>} : vector<16x128xbf16>, vector<128x32xbf16>, vector<16x32xf32> -> vector<16x32xf32>
    %8 = arith.addf %3, %7 : vector<16x32xf32>
    %c0_6 = arith.constant 0 : index
    %c0_7 = arith.constant 0 : index
    %9 = vector.load %arg7[%c0_6, %c0_7] : memref<16x32xf32, #tpu.memory_space<vmem>>, vector<16x32xf32>
    tpu.vector_store %arg7[%c0_6, %c0_7], %8 {strides = array<i32>} : memref<16x32xf32, #tpu.memory_space<vmem>>, vector<16x32xf32>,
    %c0_i32_8 = arith.constant 0 : i32
    %10 = arith.cmpi eq, %arg2, %c0_i32_8 : i32
    %11 = arith.extui %10 : i1 to i32
    %c0_i32_9 = arith.constant 0 : i32
    %12 = arith.cmpi ne, %11, %c0_i32_9 : i32
    scf.if %12 {
      %c0_10 = arith.constant 0 : index
      %c0_11 = arith.constant 0 : index
      %13 = vector.load %arg7[%c0_10, %c0_11] : memref<16x32xf32, #tpu.memory_space<vmem>>, vector<16x32xf32>
      %c0_12 = arith.constant 0 : index
      %c0_13 = arith.constant 0 : index
      %14 = vector.load %arg5[%c0_12, %c0_13] : memref<16x32xf32, #tpu.memory_space<vmem>>, vector<16x32xf32>
      %15 = arith.addf %13, %14 : vector<16x32xf32>
      %c0_14 = arith.constant 0 : index
      %c0_15 = arith.constant 0 : index
      %16 = vector.load %arg6[%c0_14, %c0_15] : memref<16x32xf32, #tpu.memory_space<vmem>>, vector<16x32xf32>
      tpu.vector_store %arg6[%c0_14, %c0_15], %15 {strides = array<i32>} : memref<16x32xf32, #tpu.memory_space<vmem>>, vector<16x32xf32>,
    } else {
    }
    return
  }
  func.func @transform_0(%arg0: i32, %arg1: i32, %arg2: i32) -> (i32, i32) {
    %c0_i32 = arith.constant 0 : i32
    return %arg0, %arg2 : i32, i32
  }
  func.func @transform_1(%arg0: i32, %arg1: i32, %arg2: i32) -> (i32, i32) {
    %c0_i32 = arith.constant 0 : i32
    return %arg2, %arg1 : i32, i32
  }
  func.func @transform_2(%arg0: i32, %arg1: i32, %arg2: i32) -> (i32, i32) {
    %c0_i32 = arith.constant 0 : i32
    return %arg0, %arg1 : i32, i32
  }
  func.func @transform_3(%arg0: i32, %arg1: i32, %arg2: i32) -> (i32, i32) {
    %c0_i32 = arith.constant 0 : i32
    return %arg0, %arg1 : i32, i32
  }
}

module attributes {stable_mosaic.version = 11 : i64} {
  func.func @_norm_linear_l2_kernel(%arg0: i32, %arg1: i32, %arg2: memref<16x32xf32, #tpu.memory_space<vmem>>, %arg3: memref<1x32xf32, #tpu.memory_space<vmem>>, %arg4: memref<32x32xbf16, #tpu.memory_space<vmem>>, %arg5: memref<1x32xf32, #tpu.memory_space<vmem>>, %arg6: memref<16x32xf32, #tpu.memory_space<vmem>>) attributes {dimension_semantics = [#tpu.dimension_semantics<parallel>, #tpu.dimension_semantics<parallel>], iteration_bounds = array<i64: 1, 1>, scalar_prefetch = 0 : i64, scratch_operands = 0 : i64, tpu.core_type = #tpu.core_type<tc>, window_params = [{transform_indices = @transform_0, window_bounds = array<i64: 16, 32>}, {pipeline_mode = #tpu.pipeline_mode<synchronous>, transform_indices = @transform_1, window_bounds = array<i64: 1, 32>}, {transform_indices = @transform_2, window_bounds = array<i64: 32, 32>}, {transform_indices = @transform_3, window_bounds = array<i64: 1, 32>}, {transform_indices = @transform_4, window_bounds = array<i64: 16, 32>}]} {
    %c0 = arith.constant 0 : index
    %c0_0 = arith.constant 0 : index
    %0 = vector.load %arg2[%c0, %c0_0] : memref<16x32xf32, #tpu.memory_space<vmem>>, vector<16x32xf32>
    %1 = arith.mulf %0, %0 : vector<16x32xf32>
    %cst = arith.constant dense<0.000000e+00> : vector<16xf32>
    %2 = vector.multi_reduction <add>, %1, %cst [1] : vector<16x32xf32> to vector<16xf32>
    %3 = vector.shape_cast %2 : vector<16xf32> to vector<16x1xf32>
    %cst_1 = arith.constant 1.000000e-24 : f32
    %4 = vector.broadcast %cst_1 : f32 to vector<16x1xf32>
    %5 = arith.maximumf %3, %4 : vector<16x1xf32>
    %6 = math.rsqrt %5 : vector<16x1xf32>
    %7 = vector.broadcast %6 : vector<16x1xf32> to vector<16x32xf32>
    %8 = arith.mulf %0, %7 : vector<16x32xf32>
    %cst_2 = arith.constant 5.65685415 : f32
    %9 = vector.broadcast %cst_2 : f32 to vector<16x32xf32>
    %10 = arith.mulf %8, %9 : vector<16x32xf32>
    %c0_3 = arith.constant 0 : index
    %c0_4 = arith.constant 0 : index
    %11 = vector.load %arg3[%c0_3, %c0_4] : memref<1x32xf32, #tpu.memory_space<vmem>>, vector<1x32xf32>
    %cst_5 = arith.constant 1.000000e+00 : f32
    %12 = vector.broadcast %cst_5 : f32 to vector<1x32xf32>
    %13 = arith.addf %11, %12 : vector<1x32xf32>
    %14 = vector.broadcast %13 : vector<1x32xf32> to vector<16x32xf32>
    %15 = arith.mulf %10, %14 : vector<16x32xf32>
    %16 = arith.truncf %15 : vector<16x32xf32> to vector<16x32xbf16>
    %c0_6 = arith.constant 0 : index
    %c0_7 = arith.constant 0 : index
    %17 = vector.load %arg4[%c0_6, %c0_7] : memref<32x32xbf16, #tpu.memory_space<vmem>>, vector<32x32xbf16>
    %cst_8 = arith.constant dense<0.000000e+00> : vector<16x32xf32>
    %18 = tpu.matmul %16, %17, %cst_8 {dimension_numbers = #tpu.dot_dimension_numbers<[1], [0], [0], [1], [0, 0, 1, 1], [], []>} : vector<16x32xbf16>, vector<32x32xbf16>, vector<16x32xf32> -> vector<16x32xf32>
    %19 = arith.mulf %15, %15 : vector<16x32xf32>
    %cst_9 = arith.constant dense<0.000000e+00> : vector<16xf32>
    %20 = vector.multi_reduction <add>, %19, %cst_9 [1] : vector<16x32xf32> to vector<16xf32>
    %21 = vector.shape_cast %20 : vector<16xf32> to vector<16x1xf32>
    %cst_10 = arith.constant 2.000000e+00 : f32
    %22 = vector.broadcast %cst_10 : f32 to vector<16x32xf32>
    %23 = arith.mulf %22, %18 : vector<16x32xf32>
    %24 = vector.broadcast %21 : vector<16x1xf32> to vector<16x32xf32>
    %25 = arith.subf %23, %24 : vector<16x32xf32>
    %c0_11 = arith.constant 0 : index
    %c0_12 = arith.constant 0 : index
    %26 = vector.load %arg5[%c0_11, %c0_12] : memref<1x32xf32, #tpu.memory_space<vmem>>, vector<1x32xf32>
    %27 = vector.broadcast %26 : vector<1x32xf32> to vector<16x32xf32>
    %28 = arith.addf %25, %27 : vector<16x32xf32>
    %c0_13 = arith.constant 0 : index
    %c0_14 = arith.constant 0 : index
    %29 = vector.load %arg6[%c0_13, %c0_14] : memref<16x32xf32, #tpu.memory_space<vmem>>, vector<16x32xf32>
    tpu.vector_store %arg6[%c0_13, %c0_14], %28 {strides = array<i32>} : memref<16x32xf32, #tpu.memory_space<vmem>>, vector<16x32xf32>,
    return
  }
  func.func @transform_0(%arg0: i32, %arg1: i32) -> (i32, i32) {
    %c0_i32 = arith.constant 0 : i32
    %c0_i32_0 = arith.constant 0 : i32
    return %arg0, %c0_i32 : i32, i32
  }
  func.func @transform_1(%arg0: i32, %arg1: i32) -> (i32, i32) {
    %c0_i32 = arith.constant 0 : i32
    %c0_i32_0 = arith.constant 0 : i32
    %c0_i32_1 = arith.constant 0 : i32
    return %c0_i32, %c0_i32_0 : i32, i32
  }
  func.func @transform_2(%arg0: i32, %arg1: i32) -> (i32, i32) {
    %c0_i32 = arith.constant 0 : i32
    %c0_i32_0 = arith.constant 0 : i32
    return %c0_i32, %arg1 : i32, i32
  }
  func.func @transform_3(%arg0: i32, %arg1: i32) -> (i32, i32) {
    %c0_i32 = arith.constant 0 : i32
    %c0_i32_0 = arith.constant 0 : i32
    return %c0_i32, %arg1 : i32, i32
  }
  func.func @transform_4(%arg0: i32, %arg1: i32) -> (i32, i32) {
    %c0_i32 = arith.constant 0 : i32
    return %arg0, %arg1 : i32, i32
  }
}

</mosaic_0001>

<bundles_post_ra>
// kernel: transformer_forward.11
= control target key start
LH: loop header
LB: loop body
LE: loop exit
PB: predicated region body
PF: predicated region fallthrough
CT: control target
= control target key end

     0   :  { %vm19_vm0 = vcmask 261120   ;;  %v134_v7 = vmov 0.0   ;;  %vm135_vm1 = vmmov 0   ;;  %v37_v13 = vlaneseq  ;;  %s180_s0 = inlined_call_operand.vmem [shape: f32[16,32], index: 0, kind: input, shape index: {}]   ;;  %s181_s2 = inlined_call_operand.vmem [shape: bf16[32,96], index: 2, kind: input, shape index: {}]   ;;  %s182_s1 = inlined_call_operand.vmem [shape: f32[1,32], index: 1, kind: input, shape index: {}]   ;;  %s183_s3 = inlined_call_operand.vmem [shape: f32[16,96], index: 3, kind: output, shape index: {}]  }
   0x1   :  { %v15_v0 = vld [vmem:[%s180_s0] sm:$0xff]  ;;  %v16_v1 = vld [vmem:[%s180_s0 + $0x8] sm:$0xff]  ;;  %118 = vmatprep.subr.bf16.mxu0 %v134_v7  ;;  %122 = vmatprep.mubr.msk.bf16.mxu0 %vm135_vm1, %v134_v7  ;;  %vm105_vm2 = vcmask 785408  }
   0x2   :  { %v17_v2 = vmul.f32 %v15_v0, %v15_v0  ;;  %v18_v3 = vmul.f32 %v16_v1, %v16_v1  ;;  %v128_v6 = vld [vmem:[%s181_s2] sm:$0xff]   ;;  %v129_v8 = vld [vmem:[%s181_s2 + $0x8] sm:$0xff]   ;;  %v38_v14 = vshrl.u32 %v37_v13, 7 }
   0x3   :  { %119 = vmatpush3.bf16.msra.mxu0 %v128_v6  ;;  %v34_v15 = vld [vmem:[%s182_s1] sm:$0x1] }
   0x4   :  { %v20_v4 = vsel %vm19_vm0, %v17_v2, 0.0  ;;  %v23_v5 = vsel %vm19_vm0, %v18_v3, 0.0  ;;  %120 = vmatprep.subr.bf16.mxu0 %v134_v7  ;;  %v35_v18 = vadd.f32 1.0, %v34_v15  ;;  %v39_v19 = vsub.s32 0, %v38_v14 }
   0x5   :  { %21 = vadd.xlane.f32.xlu0 %v20_v4 }
   0x6   :  { %v40_v23 = vrot.slane %v35_v18, %v39_v19 }
   0x7   :  { %121 = vmatpush3.bf16.msra.mxu0 %v129_v8 }
   0x9   :  { %24 = vadd.xlane.f32.xlu0 %v23_v5 }
  0x92   :  { %v22_v9 = vpop.xlane.xlu0 %21 }
  0x93   :  { %v26_v10 = vmax.f32 %v22_v9, 1e-24 }
  0x95   :  { %130 = vrsqrt.f32 %v26_v10 }
  0x96   :  { %v25_v11 = vpop.xlane.xlu0 %24 }
  0x97   :  { %v27_v12 = vmax.f32 %v25_v11, 1e-24 }
  0x99   :  { %132 = vrsqrt.f32 %v27_v12 }
  0x9f   :  { %v131_v16 = vpop.eup %130 }
  0xa0   :  { %v30_v17 = vmul.f32 %v131_v16, %v15_v0 }
  0xa2   :  { %v32_v22 = vmul.f32 5.656854, %v30_v17 }
  0xa3   :  { %v133_v20 = vpop.eup %132 }
  0xa4   :  { %v31_v21 = vmul.f32 %v133_v20, %v16_v1  ;;  %v42_v25 = vmul.f32 %v40_v23, %v32_v22 }
  0xa6   :  { %v33_v24 = vmul.f32 5.656854, %v31_v21 }
  0xa8   :  { %v43_v26 = vmul.f32 %v40_v23, %v33_v24 }
  0xaa   :  { %v44_v27 = vpack.c.bf16 %v43_v26, %v42_v25 }
  0xac   :  { %123 = vmatmul.mubr.msk.bf16.vlgmr.msra.gmra.mrb[0].mxu0 %vm19_vm0, %v44_v27 }
 0x17f   :  { %v98_v28 = vpop.f32.mrb[0].mxu0 }
 0x180   :  { %106 = vst.msk [vmem:[%s183_s3] sm:$0xff] %vm105_vm2, %v98_v28  ;;  %v124_v29 = vpop.f32.mrb[1].mxu0 }
 0x181   :  { %v101_v30 = vpop.f32.mrb[2].mxu0 }
 0x182   :  { %107 = vst.msk [vmem:[%s183_s3 + $0x8] sm:$0xff] %vm105_vm2, %v101_v30  ;;  %v125_v31 = vpop.f32.mrb[3].mxu0 }

// kernel: transformer_forward.14
= control target key start
LH: loop header
LB: loop body
LE: loop exit
PB: predicated region body
PF: predicated region fallthrough
CT: control target
= control target key end

     0   :  { %vm22_vm0 = vcmask 261120   ;;  %v158_v6 = vmov 0.0   ;;  %vm159_vm1 = vmmov 0   ;;  %v40_v11 = vlaneseq  ;;  %s214_s0 = inlined_call_operand.vmem [shape: f32[16,32], index: 0, kind: input, shape index: {}]   ;;  %s215_s2 = inlined_call_operand.vmem [shape: bf16[32,128], index: 2, kind: input, shape index: {}]   ;;  %s216_s1 = inlined_call_operand.vmem [shape: f32[1,32], index: 1, kind: input, shape index: {}]   ;;  %s217_s3 = inlined_call_operand.vmem [shape: f32[1,128], index: 3, kind: input, shape index: {}]   ;;  %s218_s4 = inlined_call_operand.vmem [shape: f32[16,128], index: 4, kind: output, shape index: {}]  }
   0x1   :  { %v18_v0 = vld [vmem:[%s214_s0] sm:$0xff]  ;;  %v19_v1 = vld [vmem:[%s214_s0 + $0x8] sm:$0xff]  ;;  %142 = vmatprep.subr.bf16.mxu0 %v158_v6  ;;  %146 = vmatprep.mubr.msk.bf16.mxu0 %vm159_vm1, %v158_v6 }
   0x2   :  { %v20_v2 = vmul.f32 %v18_v0, %v18_v0  ;;  %v21_v3 = vmul.f32 %v19_v1, %v19_v1  ;;  %v152_v7 = vld [vmem:[%s215_s2] sm:$0xff]   ;;  %v153_v8 = vld [vmem:[%s215_s2 + $0x8] sm:$0xff]   ;;  %v41_v14 = vshrl.u32 %v40_v11, 7 }
   0x3   :  { %143 = vmatpush3.bf16.msra.mxu0 %v152_v7  ;;  %v37_v15 = vld [vmem:[%s216_s1] sm:$0x1] }
   0x4   :  { %v23_v4 = vsel %vm22_vm0, %v20_v2, 0.0  ;;  %v26_v5 = vsel %vm22_vm0, %v21_v3, 0.0  ;;  %144 = vmatprep.subr.bf16.mxu0 %v158_v6  ;;  %v38_v16 = vadd.f32 1.0, %v37_v15  ;;  %v42_v17 = vsub.s32 0, %v41_v14  ;;  %v138_v36 = vld [vmem:[%s217_s3] ss:$0 sm:$0xff] }
   0x5   :  { %24 = vadd.xlane.f32.xlu0 %v23_v4 }
   0x6   :  { %v43_v20 = vrot.slane %v38_v16, %v42_v17 }
   0x7   :  { %145 = vmatpush3.bf16.msra.mxu0 %v153_v8 }
   0x9   :  { %27 = vadd.xlane.f32.xlu0 %v26_v5 }
  0x92   :  { %v25_v9 = vpop.xlane.xlu0 %24 }
  0x93   :  { %v29_v10 = vmax.f32 %v25_v9, 1e-24 }
  0x95   :  { %154 = vrsqrt.f32 %v29_v10 }
  0x96   :  { %v28_v12 = vpop.xlane.xlu0 %27 }
  0x97   :  { %v30_v13 = vmax.f32 %v28_v12, 1e-24 }
  0x99   :  { %156 = vrsqrt.f32 %v30_v13 }
  0x9f   :  { %v155_v18 = vpop.eup %154 }
  0xa0   :  { %v33_v19 = vmul.f32 %v155_v18, %v18_v0 }
  0xa2   :  { %v35_v21 = vmul.f32 5.656854, %v33_v19 }
  0xa3   :  { %v157_v22 = vpop.eup %156 }
  0xa4   :  { %v45_v23 = vmul.f32 %v43_v20, %v35_v21  ;;  %v34_v24 = vmul.f32 %v157_v22, %v19_v1 }
  0xa6   :  { %v108_v25 = vmul.f32 %v45_v23, %v45_v23  ;;  %v36_v26 = vmul.f32 5.656854, %v34_v24 }
  0xa8   :  { %v110_v27 = vsel %vm22_vm0, %v108_v25, 0.0  ;;  %v46_v28 = vmul.f32 %v43_v20, %v36_v26 }
  0xa9   :  { %111 = vadd.xlane.f32.xlu1 %v110_v27 }
  0xaa   :  { %v47_v29 = vpack.c.bf16 %v46_v28, %v45_v23  ;;  %v109_v30 = vmul.f32 %v46_v28, %v46_v28 }
  0xac   :  { %147 = vmatmul.mubr.msk.bf16.vlgmr.msra.gmra.mrb[0].mxu0 %vm22_vm0, %v47_v29  ;;  %v113_v31 = vsel %vm22_vm0, %v109_v30, 0.0 }
  0xad   :  { %114 = vadd.xlane.f32.xlu1 %v113_v31 }
 0x136   :  { %v112_v32 = vpop.xlane.xlu1 %111 }
 0x13a   :  { %v115_v41 = vpop.xlane.xlu1 %114 }
 0x17f   :  { %v101_v33 = vpop.f32.mrb[0].mxu0 }
 0x180   :  { %v116_v34 = vmul.f32 2.0, %v101_v33  ;;  %v148_v35 = vpop.f32.mrb[1].mxu0 }
 0x181   :  { %v104_v37 = vpop.f32.mrb[2].mxu0 }
 0x182   :  { %v118_v38 = vsub.f32 %v116_v34, %v112_v32  ;;  %v117_v39 = vmul.f32 2.0, %v104_v37  ;;  %v149_v40 = vpop.f32.mrb[3].mxu0 }
 0x184   :  { %v127_v42 = vadd.f32 %v138_v36, %v118_v38  ;;  %v119_v43 = vsub.f32 %v117_v39, %v115_v41 }
 0x186   :  { %129 = vst [vmem:[%s218_s4] sm:$0xff] %v127_v42  ;;  %v128_v44 = vadd.f32 %v138_v36, %v119_v43 }
 0x188   :  { %130 = vst [vmem:[%s218_s4 + $0x8] sm:$0xff] %v128_v44 }

// kernel: transformer_forward.13
= control target key start
LH: loop header
LB: loop body
LE: loop exit
PB: predicated region body
PF: predicated region fallthrough
CT: control target
= control target key end

     0   :  { %vm19_vm0 = vcmask 261120   ;;  %v125_v0 = vmov 0.0   ;;  %vm126_vm1 = vmmov 0   ;;  %s178_s1 = inlined_call_operand.vmem [shape: bf16[32,32], index: 1, kind: input, shape index: {}]   ;;  %s179_s0 = inlined_call_operand.vmem [shape: f32[16,32], index: 0, kind: input, shape index: {}]   ;;  %s180_s2 = inlined_call_operand.vmem [shape: f32[16,32], index: 2, kind: input, shape index: {}]   ;;  %s181_s3 = inlined_call_operand.vmem [shape: f32[16,32], index: 3, kind: output, shape index: {}]  }
   0x1   :  { %113 = vmatprep.subr.bf16.mxu0 %v125_v0  ;;  %v123_v1 = vld [vmem:[%s178_s1] sm:$0xff]   ;;  %117 = vmatprep.mubr.msk.bf16.mxu0 %vm126_vm1, %v125_v0  ;;  %20 = vst.msk [vmem:[#allocation2] sm:$0xff] %vm19_vm0, %v125_v0  ;;  %21 = vst.msk [vmem:[#allocation2 + $0x8] sm:$0xff] %vm19_vm0, %v125_v0  ;;  %v124_v2 = vld [vmem:[%s178_s1 + $0x8] sm:$0xff]  }
   0x2   :  { %114 = vmatpush3.bf16.msra.mxu0 %v123_v1  ;;  %v24_v3 = vld [vmem:[%s179_s0] sm:$0xff]  ;;  %v25_v4 = vld [vmem:[%s179_s0 + $0x8] sm:$0xff] }
   0x3   :  { %115 = vmatprep.subr.bf16.mxu0 %v125_v0  ;;  %v26_v5 = vpack.c.bf16 %v25_v4, %v24_v3  ;;  %v97_v14 = vld [vmem:[%s180_s2] sm:$0xff]  ;;  %v98_v16 = vld [vmem:[%s180_s2 + $0x8] sm:$0xff] }
   0x6   :  { %116 = vmatpush3.bf16.msra.mxu0 %v124_v2 }
   0x8   :  { %v22_v6 = vld [vmem:[#allocation2] sm:$0xff]  ;;  %v23_v8 = vld [vmem:[#allocation2 + $0x8] sm:$0xff] }
   0x9   :  { %118 = vmatmul.mubr.msk.bf16.vlgmr.msra.gmra.mrb[0].mxu0 %vm19_vm0, %v26_v5 }
  0xdc   :  { %v81_v7 = vpop.f32.mrb[0].mxu0 }
  0xdd   :  { %v88_v9 = vadd.f32 %v81_v7, %v22_v6  ;;  %v119_v10 = vpop.f32.mrb[1].mxu0 }
  0xde   :  { %v84_v11 = vpop.f32.mrb[2].mxu0 }
  0xdf   :  { %90 = vst.msk [vmem:[#allocation2] sm:$0xff] %vm19_vm0, %v88_v9  ;;  %v89_v12 = vadd.f32 %v84_v11, %v23_v8  ;;  %v120_v13 = vpop.f32.mrb[3].mxu0 }
  0xe1   :  { %91 = vst.msk [vmem:[#allocation2 + $0x8] sm:$0xff] %vm19_vm0, %v89_v12 }
  0xe6   :  { %v95_v15 = vld [vmem:[#allocation2] sm:$0xff] }
  0xe7   :  { %v99_v17 = vadd.f32 %v97_v14, %v95_v15 }
  0xe8   :  { %v96_v18 = vld [vmem:[#allocation2 + $0x8] sm:$0xff] }
  0xe9   :  { %101 = vst.msk [vmem:[%s181_s3] sm:$0xff] %vm19_vm0, %v99_v17  ;;  %v100_v19 = vadd.f32 %v98_v16, %v96_v18 }
  0xeb   :  { %102 = vst.msk [vmem:[%s181_s3 + $0x8] sm:$0xff] %vm19_vm0, %v100_v19 }

// kernel: transformer_forward.12
= control target key start
LH: loop header
LB: loop body
LE: loop exit
PB: predicated region body
PF: predicated region fallthrough
CT: control target
= control target key end

     0   :  { %v1555_v1 = vmov 0.0   ;;  %vm1556_vm0 = vmmov 0   ;;  %s1557_s8 = smov 96   ;;  %vm16_vm1 = vcmask 64512   ;;  %s1558_s9 = smov 64   ;;  %vm135_vm2 = vcmask 1043456   ;;  %s1884_s0 = inlined_call_operand.vmem [shape: f32[2,8,96], index: 0, kind: input, shape index: {}]   ;;  %s1885_s1 = inlined_call_operand.vmem [shape: f32[2,8,32], index: 1, kind: output, shape index: {}]  }
   0x1   :  { %v14_v0 = vld [vmem:[%s1884_s0] sm:$0xff]  ;;  %1411 = vmatprep.subr.bf16.mxu0 %v1555_v1  ;;  %1413 = vmatprep.mubr.msk.bf16.mxu0 %vm1556_vm0, %v1555_v1  ;;  %s1559_s10 = smov 88   ;;  %s1560_s11 = smov 120   ;;  %v1369_v16 = vld [vmem:[%s1884_s0 + $0x8] sm:$0xff]  ;;  %v9_v22 = vlaneseq  ;;  %vm681_vm4 = vcmask 130048   ;;  %vm683_vm5 = vcmask 195584  }
   0x2   :  { %v1587_v2 = vpack.c.bf16 %v14_v0, %v14_v0  ;;  %1417 = vmatprep.subr.bf16.mxu1 %v1555_v1  ;;  %1419 = vmatprep.mubr.msk.bf16.mxu1 %vm1556_vm0, %v1555_v1  ;;  %v1594_v3 = vmul.f32 %v14_v0, %v14_v0  ;;  %s1561_s12 = smov 80   ;;  %v1627_v17 = vpack.c.bf16 %v1369_v16, %v1369_v16  ;;  %s1562_s15 = smov 104   ;;  %vm685_vm6 = vcmask 261120  }
   0x3   :  { %v10_v23 = vshrl.u32 %v9_v22, 7  ;;  %v12_v28 = vand.u32 127, %v9_v22  ;;  %s1563_s0 = smov 112   ;;  %s1564_s16 = smov 72   ;;  %v1651_v35 = vmul.f32 %v1369_v16, %v1369_v16 }
   0x4   :  { %29 = vrot.lane.b32.xlu0 %v1587_v2, %s1557_s8  ;;  %v17_v8 = vsel %vm16_vm1, %v1594_v3, 0.0  ;;  %s1565_s17 = smov 56   ;;  %s1566_s18 = smov 48  }
   0x5   :  { %v1633_v25 = vsub.s32 0, %v10_v23  ;;  %vm1636_vm3 = vcmp.gt.s32.totalorder %v12_v28, %v10_v23  ;;  %s1567_s19 = smov 40   ;;  %s1568_s20 = smov 8  }
   0x6   :  { %s1569_s21 = smov 16   ;;  %s1570_s22 = smov 24  }
   0x8   :  { %21 = vrot.lane.b32.xlu0 %v1594_v3, %s1557_s8 }
  0x76   :  { %v30_v4 = vpop.permute.xlu0 %29 }
  0x77   :  { %v35_v5 = vsel %vm16_vm1, %v30_v4, 0 }
  0x78   :  { %1412 = vmatpush3.bf16.xpose.msra.mxu0 %v35_v5 }
  0x79   :  { %1429 = vmatprep.subr.bf16.mxu0 %v1555_v1 }
  0x7a   :  { %v22_v6 = vpop.permute.xlu0 %21 }
  0x7b   :  { %v24_v7 = vsel %vm16_vm1, %v22_v6, 0.0 }
  0x7c   :  { %25 = vadd.xlane.f32.xlu1 %v24_v7 }
  0x7f   :  { %1414 = vmatmul.mubr.msk.bf16.vlgmr.msra.gmra.mrb[0].mxu0 %vm16_vm1, %v1587_v2 }
  0x80   :  { %18 = vadd.xlane.f32.xlu1 %v17_v8  ;;  %1431 = vmatprep.mubr.msk.bf16.mxu0 %vm1556_vm0, %v1555_v1 }
  0x91   :  { %130 = vrot.lane.b32.xlu1 %v1587_v2, %s1558_s9 }
  0x95   :  { %193 = vrot.lane.b32.xlu1 %v1587_v2, %s1559_s10 }
  0x99   :  { %179 = vrot.lane.b32.xlu1 %v1594_v3, %s1560_s11 }
  0x9d   :  { %191 = vrot.lane.b32.xlu1 %v1587_v2, %s1560_s11 }
  0xa1   :  { %356 = vrot.lane.b32.xlu1 %v1587_v2, %s1561_s12 }
 0x109   :  { %v26_v9 = vpop.xlane.xlu1 %25 }
 0x10a   :  { %79 = vxpose.xlu0.b32.start.end [1/1] (short) (narrow) %v26_v9, 8 }
 0x10d   :  { %v19_v10 = vpop.xlane.xlu1 %18 }
 0x111   :  { %v131_v11 = vpop.permute.xlu1 %130 }
 0x112   :  { %v137_v12 = vsel %vm135_vm2, %v131_v11, 0 }
 0x113   :  { %1418 = vmatpush3.bf16.msra.mxu1 %v137_v12 }
 0x114   :  { %1423 = vmatprep.subr.bf16.mxu1 %v1555_v1 }
 0x115   :  { %v1619_v13 = vpop.permute.xlu1 %193 }
 0x116   :  { %v199_v8 = vsel %vm16_vm1, %v1619_v13, 0 }
 0x119   :  { %v180_v14 = vpop.permute.xlu1 %179 }
 0x11a   :  { %v182_v15 = vsel %vm16_vm1, %v180_v14, 0.0 }
 0x11d   :  { %v192_v38 = vpop.permute.xlu1 %191 }
 0x121   :  { %v357_v40 = vpop.permute.xlu1 %356 }
 0x137   :  { %183 = vadd.xlane.f32.xlu0 %v182_v15 }
 0x14d   :  { %185 = vrot.lane.b32.xlu0 %v1594_v3, %s1559_s10 }
 0x151   :  { %1189 = vrot.lane.b32.xlu0 %v1627_v17, %s1562_s15 }
 0x152   :  { %v71_v18 = vpop.f32.mrb[0].mxu0 }
 0x153   :  { %v1415_v19 = vpop.f32.mrb[1].mxu0  ;;  %v77_v24 = vmul.f32 2.0, %v71_v18 }
 0x154   :  { %v74_v20 = vpop.f32.mrb[2].mxu0 }
 0x155   :  { %v1416_v21 = vpop.f32.mrb[3].mxu0  ;;  %348 = vrot.lane.b32.xlu0 %v1594_v3, %s1561_s12  ;;  %v78_v26 = vsub.f32 %v77_v24, %v19_v10 }
 0x159   :  { %857 = vrot.lane.b32.xlu0 %v1651_v35, %s1559_s10 }
 0x15d   :  { %1020 = vrot.lane.b32.xlu0 %v1651_v35, %s1561_s12 }
 0x161   :  { %1183 = vrot.lane.b32.xlu0 %v1651_v35, %s1564_s16 }
 0x165   :  { %505 = vrot.lane.b32.xlu0 %v1594_v3, %s1562_s15 }
 0x169   :  { %851 = vrot.lane.b32.xlu0 %v1651_v35, %s1560_s11 }
 0x16d   :  { %1014 = vrot.lane.b32.xlu0 %v1651_v35, %s1563_s0 }
 0x171   :  { %1177 = vrot.lane.b32.xlu0 %v1651_v35, %s1562_s15 }
 0x18a   :  { %v95_v27 = vpop.trf.xlu0 }
 0x18b   :  { %v114_v29 = vrot.slane %v95_v27, %v1633_v25 }
 0x18d   :  { %v115_v30 = vsub.f32 %v78_v26, %v114_v29 }
 0x18f   :  { %v116_v32 = vmul.f32 0.35355338, %v115_v30 }
 0x191   :  { %v117_v33 = vsel %vm1636_vm3, -3.4028235e+38, %v116_v32 }
 0x192   :  { %v118_v34 = vsel %vm16_vm1, %v117_v33, -inf }
 0x193   :  { %119 = vmax.xlane.f32.xlu1 %v118_v34 }
 0x1a4   :  { %354 = vrot.lane.b32.xlu1 %v1587_v2, %s1563_s0 }
 0x1a8   :  { %519 = vrot.lane.b32.xlu1 %v1587_v2, %s1564_s16 }
 0x1ac   :  { %517 = vrot.lane.b32.xlu1 %v1587_v2, %s1562_s15 }
 0x1b0   :  { %702 = vrot.lane.b32.xlu1 %v1627_v17, %s1557_s8 }
 0x1b4   :  { %865 = vrot.lane.b32.xlu1 %v1627_v17, %s1559_s10 }
 0x1b8   :  { %863 = vrot.lane.b32.xlu1 %v1627_v17, %s1560_s11 }
 0x1bc   :  { %1028 = vrot.lane.b32.xlu1 %v1627_v17, %s1561_s12 }
 0x1c0   :  { %1026 = vrot.lane.b32.xlu1 %v1627_v17, %s1563_s0 }
 0x1c4   :  { %v1675_v36 = vpop.xlane.xlu0 %183 }
 0x1c8   :  { %v186_v37 = vpop.permute.xlu0 %185 }
 0x1c9   :  { %v188_v56 = vsel %vm16_vm1, %v186_v37, 0.0 }
 0x1cc   :  { %v1677_v39 = vpop.permute.xlu0 %1189 }
 0x1d0   :  { %v1679_v41 = vpop.permute.xlu0 %348 }
 0x1d1   :  { %v351_v22 = vsel %vm16_vm1, %v1679_v41, 0.0 }
 0x1d4   :  { %v1681_v45 = vpop.permute.xlu0 %857 }
 0x1d5   :  { %v860_v27 = vsel %vm16_vm1, %v1681_v45, 0.0 }
 0x1d8   :  { %v1021_v46 = vpop.permute.xlu0 %1020 }
 0x1d9   :  { %v1023_v53 = vsel %vm16_vm1, %v1021_v46, 0.0 }
 0x1da   :  { %1024 = vadd.xlane.f32.xlu0 %v1023_v53 }
 0x1dc   :  { %v1683_v47 = vpop.permute.xlu0 %1183 }
 0x1e0   :  { %v1686_v50 = vpop.permute.xlu0 %505 }
 0x1e4   :  { %v1688_v51 = vpop.permute.xlu0 %851 }
 0x1e8   :  { %v1690_v52 = vpop.permute.xlu0 %1014 }
 0x1ec   :  { %v1178_v54 = vpop.permute.xlu0 %1177 }
 0x1ed   :  { %v1180_v55 = vsel %vm16_vm1, %v1178_v54, 0.0 }
 0x1ee   :  { %1181 = vadd.xlane.f32.xlu0 %v1180_v55 }
 0x220   :  { %v120_v42 = vpop.xlane.xlu1 %119 }
 0x221   :  { %v121_v43 = vsub.f32 %v117_v33, %v120_v42 }
 0x223   :  { %v122_v44 = vmul.f32 1.442695, %v121_v43 }
 0x224   :  { %v355_v57 = vpop.permute.xlu1 %354 }
 0x225   :  { %1523 = vpow2.f32 %v122_v44 }
 0x228   :  { %v520_v58 = vpop.permute.xlu1 %519 }
 0x229   :  { %v525_v9 = vsel %vm16_vm1, %v520_v58, 0 }
 0x22c   :  { %v518_v59 = vpop.permute.xlu1 %517 }
 0x22f   :  { %v1524_v48 = vpop.eup %1523 }
 0x230   :  { %v124_v49 = vsel %vm16_vm1, %v1524_v48, 0.0  ;;  %v703_v60 = vpop.permute.xlu1 %702 }
 0x231   :  { %125 = vadd.xlane.f32.xlu1 %v124_v49  ;;  %v708_v10 = vsel %vm16_vm1, %v703_v60, 0 }
 0x234   :  { %v866_v61 = vpop.permute.xlu1 %865 }
 0x235   :  { %v871_v11 = vsel %vm16_vm1, %v866_v61, 0 }
 0x238   :  { %v864_v62 = vpop.permute.xlu1 %863 }
 0x23c   :  { %v1029_v63 = vpop.permute.xlu1 %1028 }
 0x23d   :  { %v1034_v14 = vsel %vm16_vm1, %v1029_v63, 0 }
 0x240   :  { %v1027_v0 = vpop.permute.xlu1 %1026 }
 0x242   :  { %1191 = vrot.lane.b32.xlu1 %v1627_v17, %s1564_s16 }
 0x266   :  { %189 = vadd.xlane.f32.xlu1 %v188_v56 }
 0x267   :  { %v1025_v33 = vpop.xlane.xlu0 %1024 }
 0x277   :  { %294 = vrot.lane.b32.xlu1 %v1587_v2, %s1565_s17 }
 0x27b   :  { %511 = vrot.lane.b32.xlu1 %v1594_v3, %s1564_s16 }
 0x27f   :  { %342 = vrot.lane.b32.xlu1 %v1594_v3, %s1563_s0  ;;  %v362_v3 = vsel %vm16_vm1, %v357_v40, 0 }
 0x283   :  { %694 = vrot.lane.b32.xlu1 %v1651_v35, %s1557_s8 }
 0x2be   :  { %v126_v4 = vpop.xlane.xlu1 %125 }
 0x2bf   :  { %1525 = vrcp.f32 %v126_v4 }
 0x2c2   :  { %v1192_v12 = vpop.permute.xlu1 %1191 }
 0x2c3   :  { %v1197_v19 = vsel %vm16_vm1, %v1192_v12, 0 }
 0x2c9   :  { %v1526_v5 = vpop.eup %1525 }
 0x2ca   :  { %v128_v6 = vmul.f32 %v1526_v5, %v1524_v48 }
 0x2cc   :  { %v129_v7 = vpack.c.bf16 %v128_v6, %v128_v6 }
 0x2ce   :  { %1420 = vmatmul.mubr.msk.bf16.vlgmr.msra.gmra.mrb[0].mxu1 %vm16_vm1, %v129_v7  ;;  %v508_v7 = vsel %vm16_vm1, %v1686_v50, 0.0 }
 0x2cf   :  { %1424 = vmatpush3.bf16.xpose.msra.mxu1 %v199_v8  ;;  %1425 = vmatprep.mubr.msk.bf16.mxu1 %vm1556_vm0, %v1555_v1 }
 0x2d0   :  { %1435 = vmatprep.subr.bf16.mxu1 %v1555_v1 }
 0x2d6   :  { %1426 = vmatmul.mubr.msk.bf16.vlgmr.msra.gmra.mrb[4].mxu1 %vm16_vm1, %v192_v38 }
 0x2d7   :  { %1436 = vmatpush3.bf16.xpose.msra.mxu1 %v362_v3  ;;  %1437 = vmatprep.mubr.msk.bf16.mxu1 %vm1556_vm0, %v1555_v1 }
 0x2d8   :  { %1447 = vmatprep.subr.bf16.mxu1 %v1555_v1 }
 0x2de   :  { %1438 = vmatmul.mubr.msk.bf16.vlgmr.msra.gmra.mrb[8].mxu1 %vm16_vm1, %v355_v57 }
 0x2df   :  { %1448 = vmatpush3.bf16.xpose.msra.mxu1 %v525_v9  ;;  %1449 = vmatprep.mubr.msk.bf16.mxu1 %vm1556_vm0, %v1555_v1 }
 0x2e0   :  { %1459 = vmatprep.subr.bf16.mxu1 %v1555_v1 }
 0x2e6   :  { %1450 = vmatmul.mubr.msk.bf16.vlgmr.msra.gmra.mrb[12].mxu1 %vm16_vm1, %v518_v59  ;;  %v1757_v59 = vpop.xlane.xlu0 %1181 }
 0x2e7   :  { %1460 = vmatpush3.bf16.xpose.msra.mxu1 %v708_v10  ;;  %1461 = vmatprep.mubr.msk.bf16.mxu1 %vm1556_vm0, %v1555_v1 }
 0x2e8   :  { %1471 = vmatprep.subr.bf16.mxu1 %v1555_v1 }
 0x2ee   :  { %1462 = vmatmul.mubr.msk.bf16.vlgmr.msra.gmra.mrb[16].mxu1 %vm16_vm1, %v1627_v17 }
 0x2ef   :  { %1472 = vmatpush3.bf16.xpose.msra.mxu1 %v871_v11  ;;  %1473 = vmatprep.mubr.msk.bf16.mxu1 %vm1556_vm0, %v1555_v1  ;;  %v690_v11 = vsel %vm16_vm1, %v1651_v35, 0.0 }
 0x2f0   :  { %1483 = vmatprep.subr.bf16.mxu1 %v1555_v1 }
 0x2f3   :  { %v190_v13 = vpop.xlane.xlu1 %189 }
 0x2f4   :  { %243 = vxpose.xlu0.b32.start.end [1/1] (short) (narrow) %v190_v13, 8 }
 0x2f6   :  { %1474 = vmatmul.mubr.msk.bf16.vlgmr.msra.gmra.mrb[20].mxu1 %vm16_vm1, %v864_v62 }
 0x2f7   :  { %1484 = vmatpush3.bf16.xpose.msra.mxu1 %v1034_v14  ;;  %v295_v15 = vpop.permute.xlu1 %294  ;;  %1485 = vmatprep.mubr.msk.bf16.mxu1 %vm1556_vm0, %v1555_v1  ;;  %v854_v14 = vsel %vm16_vm1, %v1688_v51, 0.0 }
 0x2f8   :  { %v300_v16 = vsel %vm135_vm2, %v295_v15, 0  ;;  %1495 = vmatprep.subr.bf16.mxu1 %v1555_v1 }
 0x2f9   :  { %1430 = vmatpush3.bf16.msra.mxu0 %v300_v16 }
 0x2fa   :  { %1441 = vmatprep.subr.bf16.mxu0 %v1555_v1 }
 0x2fb   :  { %v512_v18 = vpop.permute.xlu1 %511 }
 0x2fc   :  { %v514_v24 = vsel %vm16_vm1, %v512_v18, 0.0  ;;  %v1017_v18 = vsel %vm16_vm1, %v1690_v52, 0.0 }
 0x2fe   :  { %1486 = vmatmul.mubr.msk.bf16.vlgmr.msra.gmra.mrb[24].mxu1 %vm16_vm1, %v1027_v0  ;;  %v1186_v0 = vsel %vm16_vm1, %v1683_v47, 0.0 }
 0x2ff   :  { %1496 = vmatpush3.bf16.xpose.msra.mxu1 %v1197_v19  ;;  %v343_v20 = vpop.permute.xlu1 %342  ;;  %1497 = vmatprep.mubr.msk.bf16.mxu1 %vm1556_vm0, %v1555_v1 }
 0x300   :  { %v345_v21 = vsel %vm16_vm1, %v343_v20, 0.0 }
 0x301   :  { %346 = vadd.xlane.f32.xlu1 %v345_v21 }
 0x303   :  { %v695_v23 = vpop.permute.xlu1 %694 }
 0x304   :  { %v697_v26 = vsel %vm16_vm1, %v695_v23, 0.0 }
 0x305   :  { %352 = vadd.xlane.f32.xlu1 %v351_v22 }
 0x306   :  { %1498 = vmatmul.mubr.msk.bf16.vlgmr.msra.gmra.mrb[28].mxu1 %vm16_vm1, %v1677_v39 }
 0x309   :  { %515 = vadd.xlane.f32.xlu1 %v514_v24 }
 0x30d   :  { %698 = vadd.xlane.f32.xlu1 %v697_v26 }
 0x311   :  { %861 = vadd.xlane.f32.xlu1 %v860_v27 }
 0x374   :  { %v259_v5 = vpop.trf.xlu0 }
 0x375   :  { %v278_v3 = vrot.slane %v259_v5, %v1633_v25 }
 0x38e   :  { %v1752_v28 = vpop.xlane.xlu1 %346 }
 0x392   :  { %v353_v29 = vpop.xlane.xlu1 %352 }
 0x393   :  { %406 = vxpose.xlu1.b32.start.end [1/1] (short) (narrow) %v353_v29, 8 }
 0x396   :  { %v516_v30 = vpop.xlane.xlu1 %515 }
 0x397   :  { %569 = vxpose.xlu0.b32.start.end [1/1] (short) (narrow) %v516_v30, 8 }
 0x39a   :  { %v699_v32 = vpop.xlane.xlu1 %698 }
 0x39b   :  { %752 = vxpose.xlu1.b32.start.end [1/1] (short) (narrow) %v699_v32, 8  ;;  %1078 = vxpose.xlu0.b32.start.end [1/1] (short) (narrow) %v1025_v33, 8 }
 0x39e   :  { %v862_v34 = vpop.xlane.xlu1 %861 }
 0x39f   :  { %915 = vxpose.xlu1.b32.start.end [1/1] (short) (narrow) %v862_v34, 8 }
 0x3a1   :  { %v1754_v37 = vpop.f32.mrb[0].mxu1 }
 0x3a2   :  { %v1421_v38 = vpop.f32.mrb[1].mxu1 }
 0x3a3   :  { %v176_v39 = vpop.f32.mrb[2].mxu1 }
 0x3a4   :  { %v1422_v40 = vpop.f32.mrb[3].mxu1 }
 0x3a9   :  { %v235_v41 = vpop.f32.mrb[4].mxu1 }
 0x3aa   :  { %v1427_v42 = vpop.f32.mrb[5].mxu1  ;;  %v241_v4 = vmul.f32 2.0, %v235_v41 }
 0x3ab   :  { %v238_v43 = vpop.f32.mrb[6].mxu1 }
 0x3ac   :  { %v1428_v44 = vpop.f32.mrb[7].mxu1  ;;  %v242_v8 = vsub.f32 %v241_v4, %v1675_v36 }
 0x3ae   :  { %v279_v13 = vsub.f32 %v242_v8, %v278_v3 }
 0x3b0   :  { %v280_v15 = vmul.f32 0.35355338, %v279_v13 }
 0x3b1   :  { %v398_v45 = vpop.f32.mrb[8].mxu1 }
 0x3b2   :  { %v404_v46 = vmul.f32 2.0, %v398_v45  ;;  %v1439_v48 = vpop.f32.mrb[9].mxu1  ;;  %v1773_v19 = vsel %vm1636_vm3, -3.4028235e+38, %v280_v15 }
 0x3b3   :  { %v401_v49 = vpop.f32.mrb[10].mxu1  ;;  %v282_v20 = vsel %vm16_vm1, %v1773_v19, -inf }
 0x3b4   :  { %v405_v53 = vsub.f32 %v404_v46, %v1752_v28  ;;  %v1440_v54 = vpop.f32.mrb[11].mxu1 }
 0x3b9   :  { %v561_v55 = vpop.f32.mrb[12].mxu1 }
 0x3ba   :  { %v1451_v56 = vpop.f32.mrb[13].mxu1  ;;  %v567_v48 = vmul.f32 2.0, %v561_v55 }
 0x3bb   :  { %v564_v57 = vpop.f32.mrb[14].mxu1 }
 0x3bc   :  { %v1452_v58 = vpop.f32.mrb[15].mxu1 }
 0x3c1   :  { %v744_v60 = vpop.f32.mrb[16].mxu1 }
 0x3c2   :  { %v1463_v61 = vpop.f32.mrb[17].mxu1 }
 0x3c3   :  { %v747_v62 = vpop.f32.mrb[18].mxu1 }
 0x3c4   :  { %v1464_v63 = vpop.f32.mrb[19].mxu1 }
 0x3c6   :  { %1187 = vadd.xlane.f32.xlu1 %v1186_v0 }
 0x3c9   :  { %v907_v6 = vpop.f32.mrb[20].mxu1 }
 0x3ca   :  { %v1475_v9 = vpop.f32.mrb[21].mxu1  ;;  %509 = vadd.xlane.f32.xlu1 %v508_v7  ;;  %v913_v62 = vmul.f32 2.0, %v907_v6 }
 0x3cb   :  { %v910_v10 = vpop.f32.mrb[22].mxu1 }
 0x3cc   :  { %v1476_v12 = vpop.f32.mrb[23].mxu1 }
 0x3ce   :  { %691 = vadd.xlane.f32.xlu1 %v690_v11 }
 0x3d1   :  { %v1070_v47 = vpop.f32.mrb[24].mxu1 }
 0x3d2   :  { %v1487_v16 = vpop.f32.mrb[25].mxu1  ;;  %855 = vadd.xlane.f32.xlu1 %v854_v14  ;;  %v1076_v41 = vmul.f32 2.0, %v1070_v47 }
 0x3d3   :  { %v1073_v50 = vpop.f32.mrb[26].mxu1 }
 0x3d4   :  { %v1488_v36 = vpop.f32.mrb[27].mxu1 }
 0x3d6   :  { %1018 = vadd.xlane.f32.xlu1 %v1017_v18 }
 0x3d9   :  { %v1775_v35 = vpop.f32.mrb[28].mxu1 }
 0x3da   :  { %v1499_v21 = vpop.f32.mrb[29].mxu1  ;;  %283 = vmax.xlane.f32.xlu1 %v282_v20  ;;  %v1239_v20 = vmul.f32 2.0, %v1775_v35 }
 0x3db   :  { %v1236_v51 = vpop.f32.mrb[30].mxu1 }
 0x3dc   :  { %v1500_v22 = vpop.f32.mrb[31].mxu1  ;;  %v1240_v51 = vsub.f32 %v1239_v20, %v1757_v59 }
 0x413   :  { %v422_v23 = vpop.trf.xlu1 }
 0x414   :  { %v441_v24 = vrot.slane %v422_v23, %v1633_v25 }
 0x416   :  { %v442_v26 = vsub.f32 %v405_v53, %v441_v24  ;;  %v750_v53 = vmul.f32 2.0, %v744_v60 }
 0x417   :  { %v585_v34 = vpop.trf.xlu0 }
 0x418   :  { %v443_v27 = vmul.f32 0.35355338, %v442_v26  ;;  %v604_v54 = vrot.slane %v585_v34, %v1633_v25 }
 0x41a   :  { %v444_v52 = vsel %vm1636_vm3, -3.4028235e+38, %v443_v27 }
 0x41b   :  { %v445_v28 = vsel %vm16_vm1, %v444_v52, -inf  ;;  %v768_v29 = vpop.trf.xlu1  ;;  %v1094_v40 = vpop.trf.xlu0 }
 0x41c   :  { %446 = vmax.xlane.f32.xlu0 %v445_v28  ;;  %v1113_v42 = vrot.slane %v1094_v40, %v1633_v25  ;;  %v787_v63 = vrot.slane %v768_v29, %v1633_v25 }
 0x41f   :  { %v931_v30 = vpop.trf.xlu1 }
 0x420   :  { %v950_v5 = vrot.slane %v931_v30, %v1633_v25 }
 0x453   :  { %v1188_v32 = vpop.xlane.xlu1 %1187 }
 0x454   :  { %1241 = vxpose.xlu1.b32.start.end [1/1] (short) (narrow) %v1188_v32, 8 }
 0x457   :  { %v510_v33 = vpop.xlane.xlu1 %509 }
 0x458   :  { %v568_v56 = vsub.f32 %v567_v48, %v510_v33 }
 0x45a   :  { %v605_v58 = vsub.f32 %v568_v56, %v604_v54 }
 0x45b   :  { %v692_v38 = vpop.xlane.xlu1 %691 }
 0x45c   :  { %v751_v61 = vsub.f32 %v750_v53, %v692_v38  ;;  %v606_v0 = vmul.f32 0.35355338, %v605_v58 }
 0x45e   :  { %v788_v4 = vsub.f32 %v751_v61, %v787_v63  ;;  %v607_v60 = vsel %vm1636_vm3, -3.4028235e+38, %v606_v0 }
 0x45f   :  { %v856_v39 = vpop.xlane.xlu1 %855  ;;  %v608_v3 = vsel %vm16_vm1, %v607_v60, -inf }
 0x460   :  { %v914_v55 = vsub.f32 %v913_v62, %v856_v39  ;;  %v789_v7 = vmul.f32 0.35355338, %v788_v4 }
 0x462   :  { %v951_v8 = vsub.f32 %v914_v55, %v950_v5  ;;  %v790_v10 = vsel %vm1636_vm3, -3.4028235e+38, %v789_v7 }
 0x463   :  { %v1019_v43 = vpop.xlane.xlu1 %1018  ;;  %v791_v6 = vsel %vm16_vm1, %v790_v10, -inf }
 0x464   :  { %v1077_v44 = vsub.f32 %v1076_v41, %v1019_v43  ;;  %v952_v9 = vmul.f32 0.35355338, %v951_v8 }
 0x466   :  { %v1114_v45 = vsub.f32 %v1077_v44, %v1113_v42  ;;  %v953_v11 = vsel %vm1636_vm3, -3.4028235e+38, %v952_v9 }
 0x467   :  { %v954_v12 = vsel %vm16_vm1, %v953_v11, -inf  ;;  %v284_v50 = vpop.xlane.xlu1 %283 }
 0x468   :  { %v1115_v46 = vmul.f32 0.35355338, %v1114_v45  ;;  %v285_v36 = vsub.f32 %v1773_v19, %v284_v50 }
 0x46a   :  { %v1786_v49 = vsel %vm1636_vm3, -3.4028235e+38, %v1115_v46  ;;  %v286_v18 = vmul.f32 1.442695, %v285_v36 }
 0x46b   :  { %v1117_v57 = vsel %vm16_vm1, %v1786_v49, -inf }
 0x46c   :  { %1118 = vmax.xlane.f32.xlu0 %v1117_v57 }
 0x47b   :  { %609 = vmax.xlane.f32.xlu1 %v608_v3 }
 0x47f   :  { %792 = vmax.xlane.f32.xlu1 %v791_v6 }
 0x483   :  { %955 = vmax.xlane.f32.xlu1 %v954_v12 }
 0x4a9   :  { %v447_v13 = vpop.xlane.xlu0 %446 }
 0x4aa   :  { %v448_v47 = vsub.f32 %v444_v52, %v447_v13 }
 0x4ac   :  { %v449_v14 = vmul.f32 1.442695, %v448_v47 }
 0x4ae   :  { %1527 = vpow2.f32 %v449_v14 }
 0x4af   :  { %1529 = vpow2.f32 %v286_v18 }
 0x4b8   :  { %v1802_v15 = vpop.eup %1527 }
 0x4b9   :  { %v451_v16 = vsel %vm16_vm1, %v1802_v15, 0.0  ;;  %v1530_v27 = vpop.eup %1529 }
 0x4ba   :  { %452 = vadd.xlane.f32.xlu0 %v451_v16  ;;  %v288_v52 = vsel %vm16_vm1, %v1530_v27, 0.0 }
 0x4d0   :  { %457 = vrot.lane.b32.xlu0 %v1587_v2, %s1566_s18 }
 0x4d4   :  { %v1257_v21 = vpop.trf.xlu1 }
 0x4d5   :  { %v1276_v22 = vrot.slane %v1257_v21, %v1633_v25 }
 0x4d7   :  { %v1277_v23 = vsub.f32 %v1240_v51, %v1276_v22 }
 0x4d9   :  { %v1278_v24 = vmul.f32 0.35355338, %v1277_v23 }
 0x4db   :  { %v1279_v26 = vsel %vm1636_vm3, -3.4028235e+38, %v1278_v24 }
 0x4dc   :  { %v1280_v19 = vsel %vm16_vm1, %v1279_v26, -inf }
 0x4dd   :  { %1281 = vmax.xlane.f32.xlu1 %v1280_v19 }
 0x4e1   :  { %289 = vadd.xlane.f32.xlu1 %v288_v52 }
 0x4f2   :  { %620 = vrot.lane.b32.xlu1 %v1587_v2, %s1567_s19 }
 0x4f9   :  { %v1119_v25 = vpop.xlane.xlu0 %1118 }
 0x4fa   :  { %v1120_v31 = vsub.f32 %v1786_v49, %v1119_v25 }
 0x4fc   :  { %v1121_v38 = vmul.f32 1.442695, %v1120_v31 }
 0x508   :  { %v610_v35 = vpop.xlane.xlu1 %609 }
 0x509   :  { %v611_v59 = vsub.f32 %v607_v60, %v610_v35 }
 0x50b   :  { %v612_v28 = vmul.f32 1.442695, %v611_v59 }
 0x50c   :  { %v793_v29 = vpop.xlane.xlu1 %792 }
 0x50d   :  { %1531 = vpow2.f32 %v612_v28  ;;  %v794_v30 = vsub.f32 %v790_v10, %v793_v29 }
 0x50f   :  { %v795_v32 = vmul.f32 1.442695, %v794_v30 }
 0x510   :  { %v956_v33 = vpop.xlane.xlu1 %955 }
 0x511   :  { %1533 = vpow2.f32 %v795_v32  ;;  %v957_v34 = vsub.f32 %v953_v11, %v956_v33 }
 0x513   :  { %v958_v39 = vmul.f32 1.442695, %v957_v34 }
 0x515   :  { %1535 = vpow2.f32 %v958_v39 }
 0x516   :  { %1537 = vpow2.f32 %v1121_v38 }
 0x517   :  { %v1532_v40 = vpop.eup %1531 }
 0x518   :  { %v614_v2 = vsel %vm16_vm1, %v1532_v40, 0.0 }
 0x519   :  { %615 = vadd.xlane.f32.xlu1 %v614_v2 }
 0x51b   :  { %v1534_v41 = vpop.eup %1533 }
 0x51c   :  { %v797_v42 = vsel %vm16_vm1, %v1534_v41, 0.0 }
 0x51d   :  { %798 = vadd.xlane.f32.xlu1 %v797_v42 }
 0x51f   :  { %v1821_v43 = vpop.eup %1535 }
 0x520   :  { %v960_v44 = vsel %vm16_vm1, %v1821_v43, 0.0  ;;  %v1825_v45 = vpop.eup %1537 }
 0x521   :  { %961 = vadd.xlane.f32.xlu1 %v960_v44  ;;  %v1123_v46 = vsel %vm16_vm1, %v1825_v45, 0.0 }
 0x525   :  { %1124 = vadd.xlane.f32.xlu1 %v1123_v46 }
 0x536   :  { %803 = vrot.lane.b32.xlu1 %v1627_v17, %s1558_s9 }
 0x53a   :  { %966 = vrot.lane.b32.xlu1 %v1627_v17, %s1565_s17 }
 0x53e   :  { %1129 = vrot.lane.b32.xlu1 %v1627_v17, %s1566_s18 }
 0x542   :  { %1292 = vrot.lane.b32.xlu1 %v1627_v17, %s1567_s19 }
 0x547   :  { %v453_v56 = vpop.xlane.xlu0 %452 }
 0x54b   :  { %v458_v62 = vpop.permute.xlu0 %457 }
 0x54c   :  { %v463_v17 = vsel %vm135_vm2, %v458_v62, 0 }
 0x56a   :  { %v1282_v48 = vpop.xlane.xlu1 %1281 }
 0x56b   :  { %v1283_v49 = vsub.f32 %v1279_v26, %v1282_v48 }
 0x56d   :  { %v1284_v53 = vmul.f32 1.442695, %v1283_v49 }
 0x56e   :  { %v290_v54 = vpop.xlane.xlu1 %289 }
 0x56f   :  { %1539 = vpow2.f32 %v1284_v53 }
 0x570   :  { %1541 = vrcp.f32 %v290_v54 }
 0x571   :  { %1543 = vrcp.f32 %v453_v56 }
 0x572   :  { %v621_v5 = vpop.permute.xlu1 %620 }
 0x573   :  { %v626_v8 = vsel %vm135_vm2, %v621_v5, 0 }
 0x579   :  { %v1837_v57 = vpop.eup %1539 }
 0x57a   :  { %v1542_v58 = vpop.eup %1541  ;;  %v1286_v61 = vsel %vm16_vm1, %v1837_v57, 0.0 }
 0x57b   :  { %v292_v63 = vmul.f32 %v1542_v58, %v1530_v27  ;;  %1287 = vadd.xlane.f32.xlu0 %v1286_v61  ;;  %v1544_v4 = vpop.eup %1543 }
 0x57c   :  { %v455_v55 = vmul.f32 %v1544_v4, %v1802_v15 }
 0x57d   :  { %v293_v0 = vpack.c.bf16 %v292_v63, %v292_v63 }
 0x57e   :  { %v456_v7 = vpack.c.bf16 %v455_v55, %v455_v55 }
 0x57f   :  { %1432 = vmatmul.mubr.msk.bf16.vlgmr.msra.gmra.mrb[4].mxu0 %vm16_vm1, %v293_v0 }
 0x580   :  { %1442 = vmatpush3.bf16.msra.mxu0 %v463_v17  ;;  %1443 = vmatprep.mubr.msk.bf16.mxu0 %vm1556_vm0, %v1555_v1 }
 0x581   :  { %1453 = vmatprep.subr.bf16.mxu0 %v1555_v1 }
 0x587   :  { %1444 = vmatmul.mubr.msk.bf16.vlgmr.msra.gmra.mrb[8].mxu0 %vm16_vm1, %v456_v7 }
 0x588   :  { %1454 = vmatpush3.bf16.msra.mxu0 %v626_v8  ;;  %1455 = vmatprep.mubr.msk.bf16.mxu0 %vm1556_vm0, %v1555_v1 }
 0x589   :  { %1465 = vmatprep.subr.bf16.mxu0 %v1555_v1 }
 0x5a6   :  { %v616_v60 = vpop.xlane.xlu1 %615 }
 0x5a7   :  { %1545 = vrcp.f32 %v616_v60 }
 0x5aa   :  { %v799_v3 = vpop.xlane.xlu1 %798 }
 0x5ab   :  { %1547 = vrcp.f32 %v799_v3 }
 0x5ae   :  { %v962_v9 = vpop.xlane.xlu1 %961 }
 0x5af   :  { %1549 = vrcp.f32 %v962_v9 }
 0x5b1   :  { %v1546_v10 = vpop.eup %1545 }
 0x5b2   :  { %v618_v6 = vmul.f32 %v1546_v10, %v1532_v40  ;;  %v1125_v11 = vpop.xlane.xlu1 %1124 }
 0x5b3   :  { %1551 = vrcp.f32 %v1125_v11 }
 0x5b4   :  { %v619_v12 = vpack.c.bf16 %v618_v6, %v618_v6 }
 0x5b5   :  { %v1548_v13 = vpop.eup %1547 }
 0x5b6   :  { %1456 = vmatmul.mubr.msk.bf16.vlgmr.msra.gmra.mrb[12].mxu0 %vm16_vm1, %v619_v12  ;;  %v804_v47 = vpop.permute.xlu1 %803  ;;  %v801_v15 = vmul.f32 %v1548_v13, %v1534_v41 }
 0x5b7   :  { %v809_v14 = vsel %vm135_vm2, %v804_v47, 0  ;;  %1467 = vmatprep.mubr.msk.bf16.mxu0 %vm1556_vm0, %v1555_v1 }
 0x5b8   :  { %1466 = vmatpush3.bf16.msra.mxu0 %v809_v14  ;;  %v802_v50 = vpack.c.bf16 %v801_v15, %v801_v15 }
 0x5b9   :  { %1477 = vmatprep.subr.bf16.mxu0 %v1555_v1  ;;  %v1550_v18 = vpop.eup %1549 }
 0x5ba   :  { %v967_v16 = vpop.permute.xlu1 %966  ;;  %v964_v20 = vmul.f32 %v1550_v18, %v1821_v43 }
 0x5bb   :  { %v972_v36 = vsel %vm135_vm2, %v967_v16, 0 }
 0x5bc   :  { %v965_v51 = vpack.c.bf16 %v964_v20, %v964_v20 }
 0x5bd   :  { %v1552_v23 = vpop.eup %1551 }
 0x5be   :  { %1468 = vmatmul.mubr.msk.bf16.vlgmr.msra.gmra.mrb[16].mxu0 %vm16_vm1, %v802_v50  ;;  %v1130_v21 = vpop.permute.xlu1 %1129  ;;  %v1127_v24 = vmul.f32 %v1552_v23, %v1825_v45 }
 0x5bf   :  { %1478 = vmatpush3.bf16.msra.mxu0 %v972_v36  ;;  %1479 = vmatprep.mubr.msk.bf16.mxu0 %vm1556_vm0, %v1555_v1  ;;  %v1135_v22 = vsel %vm135_vm2, %v1130_v21, 0 }
 0x5c0   :  { %1489 = vmatprep.subr.bf16.mxu0 %v1555_v1  ;;  %v1128_v19 = vpack.c.bf16 %v1127_v24, %v1127_v24 }
 0x5c2   :  { %v1293_v26 = vpop.permute.xlu1 %1292 }
 0x5c3   :  { %v1298_v27 = vsel %vm135_vm2, %v1293_v26, 0 }
 0x5c6   :  { %1480 = vmatmul.mubr.msk.bf16.vlgmr.msra.gmra.mrb[20].mxu0 %vm16_vm1, %v965_v51 }
 0x5c7   :  { %1490 = vmatpush3.bf16.msra.mxu0 %v1135_v22  ;;  %1491 = vmatprep.mubr.msk.bf16.mxu0 %vm1556_vm0, %v1555_v1 }
 0x5c8   :  { %1501 = vmatprep.subr.bf16.mxu0 %v1555_v1 }
 0x5ce   :  { %1492 = vmatmul.mubr.msk.bf16.vlgmr.msra.gmra.mrb[24].mxu0 %vm16_vm1, %v1128_v19 }
 0x5cf   :  { %1502 = vmatpush3.bf16.msra.mxu0 %v1298_v27  ;;  %1503 = vmatprep.mubr.msk.bf16.mxu0 %vm1556_vm0, %v1555_v1 }
 0x608   :  { %v1288_v52 = vpop.xlane.xlu0 %1287 }
 0x609   :  { %1553 = vrcp.f32 %v1288_v52 }
 0x613   :  { %v1554_v35 = vpop.eup %1553 }
 0x614   :  { %v1290_v59 = vmul.f32 %v1554_v35, %v1837_v57 }
 0x616   :  { %v1291_v28 = vpack.c.bf16 %v1290_v59, %v1290_v59 }
 0x618   :  { %1504 = vmatmul.mubr.msk.bf16.vlgmr.msra.gmra.mrb[28].mxu0 %vm16_vm1, %v1291_v28 }
 0x652   :  { %v336_v25 = vpop.f32.mrb[4].mxu0 }
 0x653   :  { %669 = vrot.lane.b32.xlu1 %v336_v25, %s1568_s20  ;;  %v1433_v29 = vpop.f32.mrb[5].mxu0 }
 0x654   :  { %v339_v30 = vpop.f32.mrb[6].mxu0 }
 0x655   :  { %v1434_v31 = vpop.f32.mrb[7].mxu0 }
 0x65a   :  { %v499_v32 = vpop.f32.mrb[8].mxu0 }
 0x65b   :  { %673 = vrot.lane.b32.xlu1 %v499_v32, %s1569_s21  ;;  %v1445_v33 = vpop.f32.mrb[9].mxu0 }
 0x65c   :  { %v502_v34 = vpop.f32.mrb[10].mxu0 }
 0x65d   :  { %v1446_v1 = vpop.f32.mrb[11].mxu0 }
 0x689   :  { %v662_v38 = vpop.f32.mrb[12].mxu0 }
 0x68a   :  { %677 = vrot.lane.b32.xlu0 %v662_v38, %s1570_s22  ;;  %v1457_v39 = vpop.f32.mrb[13].mxu0 }
 0x68b   :  { %v665_v40 = vpop.f32.mrb[14].mxu0 }
 0x68c   :  { %v1458_v2 = vpop.f32.mrb[15].mxu0 }
 0x691   :  { %v845_v41 = vpop.f32.mrb[16].mxu0 }
 0x692   :  { %v1469_v42 = vpop.f32.mrb[17].mxu0 }
 0x693   :  { %v848_v43 = vpop.f32.mrb[18].mxu0 }
 0x694   :  { %v1470_v44 = vpop.f32.mrb[19].mxu0 }
 0x699   :  { %v1008_v45 = vpop.f32.mrb[20].mxu0 }
 0x69a   :  { %1341 = vrot.lane.b32.xlu1 %v1008_v45, %s1568_s20  ;;  %v1481_v46 = vpop.f32.mrb[21].mxu0 }
 0x69b   :  { %v1011_v48 = vpop.f32.mrb[22].mxu0 }
 0x69c   :  { %v1482_v49 = vpop.f32.mrb[23].mxu0 }
 0x6a1   :  { %v1171_v53 = vpop.f32.mrb[24].mxu0 }
 0x6a2   :  { %1345 = vrot.lane.b32.xlu1 %v1171_v53, %s1569_s21  ;;  %v1493_v54 = vpop.f32.mrb[25].mxu0 }
 0x6a3   :  { %v1174_v56 = vpop.f32.mrb[26].mxu0 }
 0x6a4   :  { %v1494_v57 = vpop.f32.mrb[27].mxu0 }
 0x6c5   :  { %v670_v0 = vpop.permute.xlu1 %669 }
 0x6c6   :  { %v680_v4 = vsel %vm16_vm1, %v1754_v37, %v670_v0 }
 0x6cd   :  { %v674_v17 = vpop.permute.xlu1 %673 }
 0x6ce   :  { %v682_v55 = vsel %vm681_vm4, %v680_v4, %v674_v17 }
 0x6eb   :  { %v1334_v58 = vpop.f32.mrb[28].mxu0 }
 0x6ec   :  { %1349 = vrot.lane.b32.xlu1 %v1334_v58, %s1570_s22  ;;  %v1505_v61 = vpop.f32.mrb[29].mxu0 }
 0x6ed   :  { %v1337_v62 = vpop.f32.mrb[30].mxu0 }
 0x6ee   :  { %v1506_v63 = vpop.f32.mrb[31].mxu0 }
 0x6fc   :  { %v678_v5 = vpop.permute.xlu0 %677 }
 0x6fd   :  { %v684_v7 = vsel %vm683_vm5, %v682_v55, %v678_v5 }
 0x6fe   :  { %686 = vst.msk [vmem:[%s1885_s1] sm:$0xff] %vm685_vm6, %v684_v7 }
 0x70c   :  { %v1342_v8 = vpop.permute.xlu1 %1341 }
 0x70d   :  { %v1352_v3 = vsel %vm16_vm1, %v845_v41, %v1342_v8 }
 0x714   :  { %v1346_v60 = vpop.permute.xlu1 %1345 }
 0x715   :  { %v1353_v9 = vsel %vm681_vm4, %v1352_v3, %v1346_v60 }
 0x75e   :  { %v1350_v10 = vpop.permute.xlu1 %1349 }
 0x75f   :  { %v1354_v6 = vsel %vm683_vm5, %v1353_v9, %v1350_v10 }
 0x760   :  { %1378 = vst.msk [vmem:[%s1885_s1 + $0x8] sm:$0xff] %vm685_vm6, %v1354_v6 }

// kernel: transformer_forward.15
= control target key start
LH: loop header
LB: loop body
LE: loop exit
PB: predicated region body
PF: predicated region fallthrough
CT: control target
= control target key end

     0   :  { %vm19_vm0 = vcmask 261120   ;;  %v199_v0 = vmov 0.0   ;;  %vm200_vm1 = vmmov 0   ;;  %s269_s1 = inlined_call_operand.vmem [shape: bf16[128,32], index: 1, kind: input, shape index: {}]   ;;  %s270_s0 = inlined_call_operand.vmem [shape: f32[16,128], index: 0, kind: input, shape index: {}]   ;;  %s271_s2 = inlined_call_operand.vmem [shape: f32[16,32], index: 2, kind: input, shape index: {}]   ;;  %s272_s3 = inlined_call_operand.vmem [shape: f32[16,32], index: 3, kind: output, shape index: {}]  }
   0x1   :  { %169 = vmatprep.subr.bf16.mxu0 %v199_v0  ;;  %v191_v1 = vld [vmem:[%s269_s1] sm:$0xff]   ;;  %185 = vmatprep.mubr.msk.bf16.mxu0 %vm200_vm1, %v199_v0  ;;  %20 = vst.msk [vmem:[#allocation2] sm:$0xff] %vm19_vm0, %v199_v0  ;;  %21 = vst.msk [vmem:[#allocation2 + $0x8] sm:$0xff] %vm19_vm0, %v199_v0  ;;  %v192_v2 = vld [vmem:[%s269_s1 + $0x8] sm:$0xff]  }
   0x2   :  { %170 = vmatpush3.bf16.msra.mxu0 %v191_v1  ;;  %v193_v3 = vld [vmem:[%s269_s1 + $0x10] sm:$0xff]   ;;  %v194_v4 = vld [vmem:[%s269_s1 + $0x18] sm:$0xff]   ;;  %v195_v5 = vld [vmem:[%s269_s1 + $0x20] sm:$0xff]  }
   0x3   :  { %171 = vmatprep.subr.bf16.mxu0 %v199_v0  ;;  %v196_v6 = vld [vmem:[%s269_s1 + $0x28] sm:$0xff]   ;;  %v197_v7 = vld [vmem:[%s269_s1 + $0x30] sm:$0xff]   ;;  %v198_v8 = vld [vmem:[%s269_s1 + $0x38] sm:$0xff]  }
   0x4   :  { %v24_v9 = vld [vmem:[%s270_s0] sm:$0xff]  ;;  %v25_v10 = vld [vmem:[%s270_s0 + $0x8] sm:$0xff] }
   0x5   :  { %v26_v11 = vpack.c.bf16 %v25_v10, %v24_v9  ;;  %v142_v20 = vld [vmem:[%s271_s2] sm:$0xff]  ;;  %v143_v22 = vld [vmem:[%s271_s2 + $0x8] sm:$0xff] }
   0x6   :  { %172 = vmatpush3.bf16.msra.mxu0 %v192_v2 }
   0x7   :  { %173 = vmatprep.subr.bf16.mxu0 %v199_v0 }
   0x8   :  { %v22_v12 = vld [vmem:[#allocation2] sm:$0xff]  ;;  %v23_v14 = vld [vmem:[#allocation2 + $0x8] sm:$0xff] }
   0xa   :  { %174 = vmatpush3.bf16.msra.mxu0 %v193_v3 }
   0xb   :  { %175 = vmatprep.subr.bf16.mxu0 %v199_v0 }
   0xe   :  { %176 = vmatpush3.bf16.msra.mxu0 %v194_v4 }
   0xf   :  { %177 = vmatprep.subr.bf16.mxu0 %v199_v0 }
  0x12   :  { %178 = vmatpush3.bf16.msra.mxu0 %v195_v5 }
  0x13   :  { %179 = vmatprep.subr.bf16.mxu0 %v199_v0 }
  0x16   :  { %180 = vmatpush3.bf16.msra.mxu0 %v196_v6 }
  0x17   :  { %181 = vmatprep.subr.bf16.mxu0 %v199_v0 }
  0x1a   :  { %182 = vmatpush3.bf16.msra.mxu0 %v197_v7 }
  0x1b   :  { %183 = vmatprep.subr.bf16.mxu0 %v199_v0 }
  0x1e   :  { %184 = vmatpush3.bf16.msra.mxu0 %v198_v8 }
  0x21   :  { %186 = vmatmul.mubr.bf16.vlgmr.msra.gmra.mrb[0].mxu0 %v26_v11 }
  0xf4   :  { %v125_v13 = vpop.f32.mrb[0].mxu0 }
  0xf5   :  { %v132_v15 = vadd.f32 %v125_v13, %v22_v12  ;;  %v187_v16 = vpop.f32.mrb[1].mxu0 }
  0xf6   :  { %v128_v17 = vpop.f32.mrb[2].mxu0 }
  0xf7   :  { %135 = vst.msk [vmem:[#allocation2] sm:$0xff] %vm19_vm0, %v132_v15  ;;  %v133_v18 = vadd.f32 %v128_v17, %v23_v14  ;;  %v188_v19 = vpop.f32.mrb[3].mxu0 }
  0xf9   :  { %136 = vst.msk [vmem:[#allocation2 + $0x8] sm:$0xff] %vm19_vm0, %v133_v18 }
  0xfe   :  { %v140_v21 = vld [vmem:[#allocation2] sm:$0xff] }
  0xff   :  { %v144_v23 = vadd.f32 %v142_v20, %v140_v21 }
 0x100   :  { %v141_v24 = vld [vmem:[#allocation2 + $0x8] sm:$0xff] }
 0x101   :  { %146 = vst.msk [vmem:[%s272_s3] sm:$0xff] %vm19_vm0, %v144_v23  ;;  %v145_v25 = vadd.f32 %v143_v22, %v141_v24 }
 0x103   :  { %147 = vst.msk [vmem:[%s272_s3 + $0x8] sm:$0xff] %vm19_vm0, %v145_v25 }

// kernel: transformer_forward.21
= control target key start
LH: loop header
LB: loop body
LE: loop exit
PB: predicated region body
PF: predicated region fallthrough
CT: control target
= control target key end

     0   :  { %vm23_vm0 = vcmask 261120   ;;  %s265_s0 = inlined_call_operand.vmem [shape: f32[16,32], index: 0, kind: input, shape index: {}]   ;;  %s266_s1 = inlined_call_operand.vmem [shape: f32[1,32], index: 1, kind: input, shape index: {}]   ;;  %s267_s2 = inlined_call_operand.vmem [shape: bf16[32,32], index: 2, kind: input, shape index: {}]   ;;  %s268_s3 = inlined_call_operand.vmem [shape: f32[1,32], index: 3, kind: input, shape index: {}]   ;;  %s269_s4 = inlined_call_operand.hbm [shape: f32[16,32], index: 4, kind: output, shape index: {}]  }
   0x1   :  { %v19_v0 = vld [vmem:[%s265_s0] sm:$0xff]  ;;  %v20_v1 = vld [vmem:[%s265_s0 + $0x8] sm:$0xff] }
   0x2   :  { %v21_v2 = vmul.f32 %v19_v0, %v19_v0  ;;  %v22_v3 = vmul.f32 %v20_v1, %v20_v1 }
   0x3   :  { %9 = vsyncpa [#allocation3], 0  ;;  %v168_v6 = vld [vmem:[%s267_s2] sm:$0xff]   ;;  %v198_v7 = vmov 0.0   ;;  %v169_v8 = vld [vmem:[%s267_s2 + $0x8] sm:$0xff]   ;;  %vm199_vm1 = vmmov 0   ;;  %v41_v11 = vlaneseq }
   0x4   :  { %v24_v4 = vsel %vm23_vm0, %v21_v2, 0.0  ;;  %v27_v5 = vsel %vm23_vm0, %v22_v3, 0.0  ;;  %155 = vmatprep.subr.bf16.mxu0 %v198_v7  ;;  %159 = vmatprep.mubr.msk.bf16.mxu0 %vm199_vm1, %v198_v7  ;;  %v38_v15 = vld [vmem:[%s266_s1] sm:$0x1]  ;;  %s200_s24 = smov [#allocation2]  }
   0x5   :  { %25 = vadd.xlane.f32.xlu0 %v24_v4  ;;  %156 = vmatpush3.bf16.msra.mxu0 %v168_v6  ;;  %v42_v14 = vshrl.u32 %v41_v11, 7  ;;  %v39_v16 = vadd.f32 1.0, %v38_v15  ;;  %v151_v36 = vld [vmem:[%s268_s3] ss:$0 sm:$0xff]  ;;  %s137_s25 = sshll.u32 %s200_s24, 4  ;;  %s138_s25 = int_to_ptr.vmem [resolvable:$true] %s137_s25 }
   0x6   :  { %157 = vmatprep.subr.bf16.mxu0 %v198_v7  ;;  %s174_s26 = scalar_lea.vmem %s138_s25, 256  ;;  %p179_p1 = scmp.lt.s32.totalorder %s138_s25, %s138_s25 }
   0x7   :  { %v43_v17 = vsub.s32 0, %v42_v14  ;;  %p175_p0 = scmp.ne.s32.totalorder %s138_s25, %s174_s26  ;;  %p180_p2 = scmp.lt.s32.totalorder %s174_s26, %s174_s26 }
   0x9   :  { %28 = vadd.xlane.f32.xlu0 %v27_v5  ;;  %158 = vmatpush3.bf16.msra.mxu0 %v169_v8  ;;  %v44_v20 = vrot.slane %v39_v16, %v43_v17  ;;  %p181_p3 = por %p180_p2, %p179_p1 }
   0xb   :  { %p182_p4 = pnand %p181_p3, %p175_p0 }
  0x92   :  { %v26_v9 = vpop.xlane.xlu0 %25 }
  0x93   :  { %v30_v10 = vmax.f32 %v26_v9, 1e-24 }
  0x95   :  { %170 = vrsqrt.f32 %v30_v10 }
  0x96   :  { %v29_v12 = vpop.xlane.xlu0 %28 }
  0x97   :  { %v31_v13 = vmax.f32 %v29_v12, 1e-24 }
  0x99   :  { %172 = vrsqrt.f32 %v31_v13 }
  0x9f   :  { %v171_v18 = vpop.eup %170 }
  0xa0   :  { %v34_v19 = vmul.f32 %v171_v18, %v19_v0 }
  0xa2   :  { %v36_v21 = vmul.f32 5.656854, %v34_v19 }
  0xa3   :  { %v173_v22 = vpop.eup %172 }
  0xa4   :  { %v46_v23 = vmul.f32 %v44_v20, %v36_v21  ;;  %v35_v24 = vmul.f32 %v173_v22, %v20_v1 }
  0xa6   :  { %v109_v25 = vmul.f32 %v46_v23, %v46_v23  ;;  %v37_v26 = vmul.f32 5.656854, %v35_v24 }
  0xa8   :  { %v111_v27 = vsel %vm23_vm0, %v109_v25, 0.0  ;;  %v47_v28 = vmul.f32 %v44_v20, %v37_v26 }
  0xa9   :  { %112 = vadd.xlane.f32.xlu1 %v111_v27 }
  0xaa   :  { %v48_v29 = vpack.c.bf16 %v47_v28, %v46_v23  ;;  %v110_v30 = vmul.f32 %v47_v28, %v47_v28 }
  0xac   :  { %160 = vmatmul.mubr.msk.bf16.vlgmr.msra.gmra.mrb[0].mxu0 %vm23_vm0, %v48_v29  ;;  %v114_v31 = vsel %vm23_vm0, %v110_v30, 0.0 }
  0xad   :  { %115 = vadd.xlane.f32.xlu1 %v114_v31 }
 0x136   :  { %v113_v32 = vpop.xlane.xlu1 %112 }
 0x13a   :  { %v116_v41 = vpop.xlane.xlu1 %115 }
 0x17f   :  { %v102_v33 = vpop.f32.mrb[0].mxu0 }
 0x180   :  { %v117_v34 = vmul.f32 2.0, %v102_v33  ;;  %v161_v35 = vpop.f32.mrb[1].mxu0 }
 0x181   :  { %v105_v37 = vpop.f32.mrb[2].mxu0 }
 0x182   :  { %v119_v38 = vsub.f32 %v117_v34, %v113_v32  ;;  %v118_v39 = vmul.f32 2.0, %v105_v37  ;;  %v162_v40 = vpop.f32.mrb[3].mxu0 }
 0x184   :  { %v128_v42 = vadd.f32 %v151_v36, %v119_v38  ;;  %v120_v43 = vsub.f32 %v118_v39, %v116_v41 }
 0x186   :  { %130 = vst.msk [vmem:[#allocation2] sm:$0xff] %vm23_vm0, %v128_v42  ;;  %v129_v44 = vadd.f32 %v151_v36, %v120_v43 }
 0x188   :  { %131 = vst.msk [vmem:[#allocation2 + $0x8] sm:$0xff] %vm23_vm0, %v129_v44 }
 0x189   :  { %185 = shalt.err (!%p182_p4)
}
 0x18a   :  { %s186_s28 = scalar_lea.hbm %s269_s4, 256 }
 0x18b   :  { %p187_p5 = scmp.ne.s32.totalorder %s269_s4, %s186_s28  ;;  %p190_p6 = scmp.lt.u32.totalorder %s186_s28, %s269_s4 }
 0x18d   :  { %p192_p7 = pnand %p190_p6, %p187_p5 }
 0x18f   :  { %195 = shalt.err (!%p192_p7)
}
 0x190   :  { %s201_s7 = smov 128   ;;  %s202_s8 = smov 8  }
 0x191   :  { %143 = dma.vmem_to_hbm [thread:$0]  %s138_s25, 256, %s269_s4, [#allocation3], %s201_s7, %s201_s7, %s202_s8  }
 0x192   :  { %196 = dma.done.wait [#allocation3], 256  }
 0x193   :  { %197 = vsyncadd [#allocation3], 4294967040 }
 0x194   :  { %147 = vsyncpa [#allocation3], 1 }

</bundles_post_ra>
